<compile_context>
chip_gen: v5e
topology: v5e:2x2
jax: 0.10.0
libtpu: 0.0.40
codegen_flags: <defaults>
</compile_context>

<pallas_src>
import math

import jax
import jax.numpy as jnp
from jax.experimental import pallas as pl
from jax.experimental.pallas import tpu as pltpu

_BN_EPS = 1e-5


# ----------------------------- kernel ---------------------------------------


def _advskm_kernel(x_ref, wa_ref, ba_ref, wb_ref, bb_ref, o_ref):
    """Feature-major fused forward: two folded matmuls + mixed cos/ReLU."""
    hid2 = wa_ref.shape[0]        # 2 * hidden_dim   (stage-1 merged width)
    hid = hid2 // 2
    half = hid // 2

    x = x_ref[...].astype(jnp.float32)                       # (in, tb)

    # Stage 1: merged (branch_1 | branch_2) Linear+Linear+BN fold.
    h = jnp.dot(wa_ref[...], x, preferred_element_type=jnp.float32)
    h = h + ba_ref[...]                                      # (2*hid, tb)
    rows = jax.lax.broadcasted_iota(jnp.int32, h.shape, 0)
    h = jnp.where(rows < hid, jnp.cos(h), jnp.maximum(h, 0.0))

    # Stage 2: block-diagonal Linear+Linear+BN fold -> [cos-half | relu-half].
    o = jnp.dot(wb_ref[...], h, preferred_element_type=jnp.float32)
    o = o + bb_ref[...]                                      # (hid, tb)
    rows2 = jax.lax.broadcasted_iota(jnp.int32, o.shape, 0)
    o = jnp.where(rows2 < half, jnp.cos(o), jnp.maximum(o, 0.0))

    o_ref[...] = o.astype(o_ref.dtype)


# ----------------------------- parameters -----------------------------------


def init_advskm_params(key, input_dim, hidden_dim, dtype=jnp.float32):
    """PyTorch-default init: Linear ~ U(-1/sqrt(fan_in), +), BN gamma=1 / beta=0."""
    hid, half = hidden_dim, hidden_dim // 2
    lin_dims = [(input_dim, hid), (hid, hid), (hid, half), (half, half)]
    bn_dims = [hid, half]
    params = {}
    for name in ("branch_1", "branch_2"):
        linears, bns = [], []
        for fan_in, fan_out in lin_dims:
            key, kw, kb = jax.random.split(key, 3)
            bound = 1.0 / math.sqrt(fan_in)
            # Weights stored as (in, out) so forward is x @ W.
            w = jax.random.uniform(kw, (fan_in, fan_out), dtype, -bound, bound)
            b = jax.random.uniform(kb, (fan_out,), dtype, -bound, bound)
            linears.append((w, b))
        for d in bn_dims:
            bns.append((jnp.ones((d,), dtype), jnp.zeros((d,), dtype),   # gamma, beta
                        jnp.zeros((d,), dtype), jnp.ones((d,), dtype)))  # mean, var
        params[name] = {"linears": linears, "bns": bns}
    return params


def _fold_branch(bp):
    """Fold Linear->Linear->BN into a single (W, b) per stage (inference BN)."""
    hp = jax.lax.Precision.HIGHEST
    (w1, b1), (w2, b2), (w3, b3), (w4, b4) = bp["linears"]
    (g1, be1, m1, v1), (g2, be2, m2, v2) = bp["bns"]
    s1 = g1 * jax.lax.rsqrt(v1 + _BN_EPS)
    t1 = be1 - m1 * s1
    s2 = g2 * jax.lax.rsqrt(v2 + _BN_EPS)
    t2 = be2 - m2 * s2
    wa = jnp.dot(w1, w2, precision=hp) * s1[None, :]          # (in, hid)
    ba = (jnp.dot(b1, w2, precision=hp) + b2) * s1 + t1       # (hid,)
    wb = jnp.dot(w3, w4, precision=hp) * s2[None, :]          # (hid, half)
    bb = (jnp.dot(b3, w4, precision=hp) + b4) * s2 + t2       # (half,)
    return wa, ba, wb, bb


# ----------------------------- wrapper ---------------------------------------


def _cdiv(a, b):
    return -(-a // b)


def _round_up(n, m):
    return _cdiv(n, m) * m


def _choose_batch_tile(b, block_b):
    """Batch lives on the 128-lane axis: tiles are multiples of 128 (or the
    whole batch when it is small).  Aim for >= 2 grid steps so v7x can shard
    the parallel batch axis across both TensorCores."""
    if b < 256:
        return b                                   # single full-extent block
    tb = min(block_b, _round_up(_cdiv(b, 2), 128))
    return max(128, (tb // 128) * 128)


def advskm_disc_forward(x, params, *, block_b=1024):
    """Pallas forward of AdvSKM_Disc: x (B, input_dim) -> (B, hidden_dim)."""
    b, input_dim = x.shape
    hid = params["branch_1"]["linears"][0][0].shape[1]
    half = hid // 2
    out_dim = hid                                  # half (cos) + half (relu)
    out_dtype = x.dtype

    # Fold each branch, then merge branches into one matmul chain.
    wa1, ba1, wb1, bb1 = _fold_branch(params["branch_1"])
    wa2, ba2, wb2, bb2 = _fold_branch(params["branch_2"])

    wa = jnp.concatenate([wa1, wa2], axis=1)                          # (in, 2*hid)
    ba = jnp.concatenate([ba1, ba2])                                  # (2*hid,)
    zeros = jnp.zeros((hid, half), wb1.dtype)
    wb = jnp.concatenate(
        [jnp.concatenate([wb1, zeros], axis=1),
         jnp.concatenate([zeros, wb2], axis=1)], axis=0)              # (2*hid, hid)
    bb = jnp.concatenate([bb1, bb2])                                  # (hid,)

    # Feature-major layout: batch on the lane axis everywhere.
    x_t = jnp.transpose(x)                                            # (in, B)
    wa_t = jnp.transpose(wa).astype(jnp.float32)                      # (2*hid, in)
    wb_t = jnp.transpose(wb).astype(jnp.float32)                      # (hid, 2*hid)
    ba_c = ba.reshape(-1, 1).astype(jnp.float32)                      # (2*hid, 1)
    bb_c = bb.reshape(-1, 1).astype(jnp.float32)                      # (hid, 1)
    weight_args = (wa_t, ba_c, wb_t, bb_c)

    tb = _choose_batch_tile(b, block_b)
    grid = _cdiv(b, tb)

    def resident(a):
        nd = a.ndim
        return pl.BlockSpec(a.shape, lambda i: (0,) * nd)   # DMA'd once, VMEM-resident

    out_t = pl.pallas_call(
        _advskm_kernel,
        out_shape=jax.ShapeDtypeStruct((out_dim, b), out_dtype),
        grid_spec=pl.GridSpec(
            grid=(grid,),
            in_specs=[pl.BlockSpec((input_dim, tb), lambda i: (0, i))]
                     + [resident(a) for a in weight_args],
            out_specs=pl.BlockSpec((out_dim, tb), lambda i: (0, i)),
        ),
        compiler_params=pltpu.CompilerParams(
            dimension_semantics=("parallel",),
        ),
    )(x_t, *weight_args)

    return jnp.transpose(out_t)                                        # (B, out_dim)


# ----------------------------- test ------------------------------------------


if __name__ == "__main__":
    key = jax.random.PRNGKey(0)
    batch, input_dim, hidden_dim = 16, 32, 32

    kx, kp = jax.random.split(key)
    x = jax.random.normal(kx, (batch, input_dim), dtype=jnp.float32)
    params = init_advskm_params(kp, input_dim, hidden_dim)

    y = advskm_disc_forward(x, params)
    jax.block_until_ready(y)

    # Pure-JAX reference (same inference-mode BatchNorm semantics, unfused).
    def reference(x, params):
        hp = jax.lax.Precision.HIGHEST

        def branch(x, bp, act):
            (w1, b1), (w2, b2), (w3, b3), (w4, b4) = bp["linears"]
            (g1, be1, m1, v1), (g2, be2, m2, v2) = bp["bns"]
            h = jnp.dot(x, w1, precision=hp) + b1
            h = jnp.dot(h, w2, precision=hp) + b2
            h = (h - m1) / jnp.sqrt(v1 + _BN_EPS) * g1 + be1
            h = act(h)
            h = jnp.dot(h, w3, precision=hp) + b3
            h = jnp.dot(h, w4, precision=hp) + b4
            h = (h - m2) / jnp.sqrt(v2 + _BN_EPS) * g2 + be2
            return act(h)

        out_cos = branch(x, params["branch_1"], jnp.cos)
        out_rel = branch(x, params["branch_2"], lambda h: jnp.maximum(h, 0.0))
        return jnp.concatenate([out_cos, out_rel], axis=1)

    y_ref = reference(x, params)
    assert y.shape == (batch, hidden_dim) and y.dtype == x.dtype
    # Tolerance loosened slightly vs the unfused version: wrapper-time
    # Linear/Linear/BN folding changes f32 rounding order.
    assert jnp.allclose(y, y_ref, atol=1e-3, rtol=1e-3), float(
        jnp.max(jnp.abs(y - y_ref)))

    print("KERNEL_OK")
</pallas_src>

<mosaic_0001>
module attributes {stable_mosaic.version = 11 : i64} {
  func.func @_advskm_kernel(%arg0: i32, %arg1: memref<32x16xf32, #tpu.memory_space<vmem>>, %arg2: memref<64x32xf32, #tpu.memory_space<vmem>>, %arg3: memref<64x1xf32, #tpu.memory_space<vmem>>, %arg4: memref<32x64xf32, #tpu.memory_space<vmem>>, %arg5: memref<32x1xf32, #tpu.memory_space<vmem>>, %arg6: memref<32x16xf32, #tpu.memory_space<vmem>>) attributes {dimension_semantics = [#tpu.dimension_semantics<parallel>], iteration_bounds = array<i64: 1>, scalar_prefetch = 0 : i64, scratch_operands = 0 : i64, tpu.core_type = #tpu.core_type<tc>, window_params = [{transform_indices = @transform_0, window_bounds = array<i64: 32, 16>}, {pipeline_mode = #tpu.pipeline_mode<synchronous>, transform_indices = @transform_1, window_bounds = array<i64: 64, 32>}, {pipeline_mode = #tpu.pipeline_mode<synchronous>, transform_indices = @transform_2, window_bounds = array<i64: 64, 1>}, {pipeline_mode = #tpu.pipeline_mode<synchronous>, transform_indices = @transform_3, window_bounds = array<i64: 32, 64>}, {pipeline_mode = #tpu.pipeline_mode<synchronous>, transform_indices = @transform_4, window_bounds = array<i64: 32, 1>}, {transform_indices = @transform_5, window_bounds = array<i64: 32, 16>}]} {
    %c0 = arith.constant 0 : index
    %c0_0 = arith.constant 0 : index
    %0 = vector.load %arg1[%c0, %c0_0] : memref<32x16xf32, #tpu.memory_space<vmem>>, vector<32x16xf32>
    %c0_1 = arith.constant 0 : index
    %c0_2 = arith.constant 0 : index
    %1 = vector.load %arg2[%c0_1, %c0_2] : memref<64x32xf32, #tpu.memory_space<vmem>>, vector<64x32xf32>
    %cst = arith.constant dense<0.000000e+00> : vector<64x16xf32>
    %2 = tpu.matmul %1, %0, %cst {dimension_numbers = #tpu.dot_dimension_numbers<[1], [0], [0], [1], [0, 0, 1, 1], [], []>} : vector<64x32xf32>, vector<32x16xf32>, vector<64x16xf32> -> vector<64x16xf32>
    %c0_3 = arith.constant 0 : index
    %c0_4 = arith.constant 0 : index
    %3 = vector.load %arg3[%c0_3, %c0_4] : memref<64x1xf32, #tpu.memory_space<vmem>>, vector<64x1xf32>
    %4 = vector.broadcast %3 : vector<64x1xf32> to vector<64x16xf32>
    %5 = arith.addf %2, %4 : vector<64x16xf32>
    %6 = tpu.iota {dimensions = array<i32: 0>} : vector<64x16xi32>
    %c32_i32 = arith.constant 32 : i32
    %7 = vector.broadcast %c32_i32 : i32 to vector<64x16xi32>
    %8 = arith.cmpi slt, %6, %7 : vector<64x16xi32>
    %9 = math.cos %5 : vector<64x16xf32>
    %cst_5 = arith.constant 0.000000e+00 : f32
    %10 = vector.broadcast %cst_5 : f32 to vector<64x16xf32>
    %11 = arith.maximumf %5, %10 : vector<64x16xf32>
    %12 = arith.select %8, %9, %11 : vector<64x16xi1>, vector<64x16xf32>
    %c0_6 = arith.constant 0 : index
    %c0_7 = arith.constant 0 : index
    %13 = vector.load %arg4[%c0_6, %c0_7] : memref<32x64xf32, #tpu.memory_space<vmem>>, vector<32x64xf32>
    %cst_8 = arith.constant dense<0.000000e+00> : vector<32x16xf32>
    %14 = tpu.matmul %13, %12, %cst_8 {dimension_numbers = #tpu.dot_dimension_numbers<[1], [0], [0], [1], [0, 0, 1, 1], [], []>} : vector<32x64xf32>, vector<64x16xf32>, vector<32x16xf32> -> vector<32x16xf32>
    %c0_9 = arith.constant 0 : index
    %c0_10 = arith.constant 0 : index
    %15 = vector.load %arg5[%c0_9, %c0_10] : memref<32x1xf32, #tpu.memory_space<vmem>>, vector<32x1xf32>
    %16 = vector.broadcast %15 : vector<32x1xf32> to vector<32x16xf32>
    %17 = arith.addf %14, %16 : vector<32x16xf32>
    %18 = tpu.iota {dimensions = array<i32: 0>} : vector<32x16xi32>
    %c16_i32 = arith.constant 16 : i32
    %19 = vector.broadcast %c16_i32 : i32 to vector<32x16xi32>
    %20 = arith.cmpi slt, %18, %19 : vector<32x16xi32>
    %21 = math.cos %17 : vector<32x16xf32>
    %cst_11 = arith.constant 0.000000e+00 : f32
    %22 = vector.broadcast %cst_11 : f32 to vector<32x16xf32>
    %23 = arith.maximumf %17, %22 : vector<32x16xf32>
    %24 = arith.select %20, %21, %23 : vector<32x16xi1>, vector<32x16xf32>
    %c0_12 = arith.constant 0 : index
    %c0_13 = arith.constant 0 : index
    %25 = vector.load %arg6[%c0_12, %c0_13] : memref<32x16xf32, #tpu.memory_space<vmem>>, vector<32x16xf32>
    tpu.vector_store %arg6[%c0_12, %c0_13], %24 {strides = array<i32>} : memref<32x16xf32, #tpu.memory_space<vmem>>, vector<32x16xf32>,
    return
  }
  func.func @transform_0(%arg0: i32) -> (i32, i32) {
    %c0_i32 = arith.constant 0 : i32
    %c0_i32_0 = arith.constant 0 : i32
    return %c0_i32, %arg0 : i32, i32
  }
  func.func @transform_1(%arg0: i32) -> (i32, i32) {
    %c0_i32 = arith.constant 0 : i32
    %c0_i32_0 = arith.constant 0 : i32
    %c0_i32_1 = arith.constant 0 : i32
    return %c0_i32, %c0_i32_0 : i32, i32
  }
  func.func @transform_2(%arg0: i32) -> (i32, i32) {
    %c0_i32 = arith.constant 0 : i32
    %c0_i32_0 = arith.constant 0 : i32
    %c0_i32_1 = arith.constant 0 : i32
    return %c0_i32, %c0_i32_0 : i32, i32
  }
  func.func @transform_3(%arg0: i32) -> (i32, i32) {
    %c0_i32 = arith.constant 0 : i32
    %c0_i32_0 = arith.constant 0 : i32
    %c0_i32_1 = arith.constant 0 : i32
    return %c0_i32, %c0_i32_0 : i32, i32
  }
  func.func @transform_4(%arg0: i32) -> (i32, i32) {
    %c0_i32 = arith.constant 0 : i32
    %c0_i32_0 = arith.constant 0 : i32
    %c0_i32_1 = arith.constant 0 : i32
    return %c0_i32, %c0_i32_0 : i32, i32
  }
  func.func @transform_5(%arg0: i32) -> (i32, i32) {
    %c0_i32 = arith.constant 0 : i32
    %c0_i32_0 = arith.constant 0 : i32
    return %c0_i32, %arg0 : i32, i32
  }
}

</mosaic_0001>

<bundles_post_ra>
// kernel: tpu_custom_call.1
= control target key start
LH: loop header
LB: loop body
LE: loop exit
PB: predicated region body
PF: predicated region fallthrough
CT: control target
= control target key end

     0   :  { %v2188_v1 = vmov 0   ;;  %vm80_vm0 = vcmask 261120   ;;  %s2988_s0 = inlined_call_operand.vmem [shape: f32[32,16], index: 0, kind: input, shape index: {}]   ;;  %s2989_s2 = inlined_call_operand.vmem [shape: f32[64,1], index: 2, kind: input, shape index: {}]   ;;  %s2990_s1 = inlined_call_operand.vmem [shape: f32[64,32], index: 1, kind: input, shape index: {}]   ;;  %s2991_s4 = inlined_call_operand.vmem [shape: f32[32,1], index: 4, kind: input, shape index: {}]   ;;  %s2992_s3 = inlined_call_operand.vmem [shape: f32[32,64], index: 3, kind: input, shape index: {}]   ;;  %s2993_s5 = inlined_call_operand.vmem [shape: f32[32,16], index: 5, kind: output, shape index: {}]  }
   0x1   :  { %v23_v0 = vld [vmem:[%s2988_s0 + $0x18] sm:$0xff]  ;;  %2185 = vset.pattern.permute.xlu0 %v2188_v1  ;;  %v22_v3 = vld [vmem:[%s2988_s0 + $0x10] sm:$0xff]  ;;  %2186 = vset.pattern.permute.xlu1 %v2188_v1  ;;  %v33_v4 = vld [vmem:[%s2989_s2 + $0x8] sm:$0xff] }
   0x2   :  { %v35_v2 = vld [vmem:[%s2989_s2 + $0x18] sm:$0xff]  ;;  %117 = vmatpush.msra.mxu0 %v23_v0  ;;  %2166 = vmatpush.msra.mxu2 %v23_v0  ;;  %v21_v5 = vld [vmem:[%s2988_s0 + $0x8] sm:$0xff]  ;;  %v20_v6 = vld [vmem:[%s2988_s0] sm:$0xff] }
   0x3   :  { %57 = vperm.xlu0 %2185, %v35_v2   ;;  %47 = vperm.xlu1 %2186, %v33_v4   ;;  %v24_v7 = vld [vmem:[%s2990_s1] sm:$0xff]  ;;  %v27_v8 = vld [vmem:[%s2990_s1 + $0x18] sm:$0xff]  ;;  %v34_v9 = vld [vmem:[%s2989_s2 + $0x10] sm:$0xff] }
   0x4   :  { %118 = vmatpush.msra.mxu0 %v22_v3  ;;  %2167 = vmatpush.msra.mxu2 %v22_v3  ;;  %v32_v10 = vld [vmem:[%s2989_s2] sm:$0xff]  ;;  %v39_v11 = vld [vmem:[%s2989_s2 + $0x38] sm:$0xff]  ;;  %v25_v12 = vld [vmem:[%s2990_s1 + $0x8] sm:$0xff] }
   0x5   :  { %2187 = vset.pattern.permute.xlu2 %v2188_v1  ;;  %v28_v13 = vld [vmem:[%s2990_s1 + $0x20] sm:$0xff]  ;;  %v38_v14 = vld [vmem:[%s2989_s2 + $0x30] sm:$0xff]  ;;  %v37_v15 = vld [vmem:[%s2989_s2 + $0x28] sm:$0xff] }
   0x6   :  { %119 = vmatpush.msra.mxu0 %v21_v5  ;;  %2168 = vmatpush.msra.mxu2 %v21_v5  ;;  %v36_v16 = vld [vmem:[%s2989_s2 + $0x20] sm:$0xff]  ;;  %v26_v17 = vld [vmem:[%s2990_s1 + $0x10] sm:$0xff]  ;;  %v29_v18 = vld [vmem:[%s2990_s1 + $0x28] sm:$0xff]  ;;  %v2189_v5 = vmov 2102212464  }
   0x7   :  { %77 = vperm.xlu2 %2187, %v39_v11   ;;  %v1416_v19 = vld [vmem:[%s2991_s4 + $0x8] sm:$0xff]  ;;  %v1417_v20 = vld [vmem:[%s2991_s4 + $0x10] sm:$0xff]  ;;  %v31_v22 = vld [vmem:[%s2990_s1 + $0x38] sm:$0xff] }
   0x8   :  { %120 = vmatpush.msra.mxu0 %v20_v6  ;;  %2169 = vmatpush.msra.mxu2 %v20_v6  ;;  %v30_v21 = vld [vmem:[%s2990_s1 + $0x30] sm:$0xff]  ;;  %v1415_v23 = vld [vmem:[%s2991_s4] sm:$0xff]  ;;  %v1418_v24 = vld [vmem:[%s2991_s4 + $0x18] sm:$0xff] }
   0x9   :  { %2118 = vmatmul.msk.f32.vlgmr.msra.gmra.mxu0 %vm80_vm0, %v24_v7  ;;  %2121 = vmatmul.msk.f32.vlgmr.msra.gmra.mxu2 %vm80_vm0, %v27_v8  ;;  %v2190_v7 = vmov 920167782  }
   0xb   :  { %52 = vperm.xlu0 %2185, %v34_v9   ;;  %42 = vperm.xlu1 %2186, %v32_v10   ;;  %v2191_v10 = vmov 1326507024  }
   0xf   :  { %72 = vperm.xlu2 %2187, %v38_v14  }
  0x11   :  { %2119 = vmatmul.msk.f32.gmra.mxu0 %vm80_vm0, %v25_v12  ;;  %2122 = vmatmul.msk.f32.gmra.mxu2 %vm80_vm0, %v28_v13 }
  0x13   :  { %67 = vperm.xlu0 %2185, %v37_v15   ;;  %62 = vperm.xlu1 %2186, %v36_v16  }
  0x17   :  { %1421 = vperm.xlu2 %2187, %v1415_v23   ;;  %v2193_v23 = vmov 2475754826  }
  0x19   :  { %2120 = vmatmul.msk.f32.gmra.mxu0 %vm80_vm0, %v26_v17  ;;  %2123 = vmatmul.msk.f32.gmra.mxu2 %vm80_vm0, %v29_v18 }
  0x1b   :  { %1426 = vperm.xlu0 %2185, %v1416_v19   ;;  %1431 = vperm.xlu1 %2186, %v1417_v20  }
  0x1f   :  { %1436 = vperm.xlu2 %2187, %v1418_v24  }
  0x21   :  { %2124 = vmatmul.msk.f32.gmra.mxu2 %vm80_vm0, %v30_v21  ;;  %v2192_v21 = vmov 683565275  }
  0x29   :  { %2125 = vmatmul.msk.f32.gmra.mxu2 %vm80_vm0, %v31_v22 }
  0x61   :  { %v2325_v58 = vpop.permute.xlu2 %77 }
  0x75   :  { %v48_v25 = vpop.permute.xlu1 %47  ;;  %v58_v31 = vpop.permute.xlu0 %57 }
  0x7d   :  { %v43_v26 = vpop.permute.xlu1 %42  ;;  %v53_v47 = vpop.permute.xlu0 %52 }
  0x85   :  { %v63_v59 = vpop.permute.xlu1 %62 }
  0x86   :  { %v122_v27 = vpop.f32.mrf.mxu0 }
  0x87   :  { %v2308_v28 = vadd.f32 %v122_v27, %v43_v26 }
  0x89   :  { %v166_v29 = vand.u32 2139095040, %v2308_v28 }
  0x8b   :  { %v167_v30 = vshrl.u32 %v166_v29, 23  ;;  %v2194_v29 = vmov 2131351028  }
  0x8c   :  { %v131_v32 = vpop.f32.mrf.mxu2 }
  0x8d   :  { %v2126_v33 = vadd.s32 4294967169, %v167_v30  ;;  %v2311_v34 = vadd.f32 %v131_v32, %v58_v31  ;;  %v68_v31 = vpop.permute.xlu0 %67 }
  0x8e   :  { %v125_v35 = vpop.f32.mrf.mxu0 }
  0x8f   :  { %v173_v36 = vadd.s32 1, %v2126_v33  ;;  %v628_v37 = vand.u32 2139095040, %v2311_v34  ;;  %v2314_v38 = vadd.f32 %v125_v35, %v48_v25  ;;  %v625_v39 = vand.u32 2147483647, %v2311_v34 }
  0x91   :  { %v629_v40 = vshrl.u32 %v628_v37, 23  ;;  %v320_v41 = vand.u32 2139095040, %v2314_v38  ;;  %vm174_vm1 = vcmp.gt.s32.totalorder %v173_v36, 0  ;;  %v632_v45 = vand.u32 8388607, %v625_v39 }
  0x92   :  { %v175_v46 = vsel %vm174_vm1, %v173_v36, 0 }
  0x93   :  { %v2135_v42 = vadd.s32 4294967169, %v629_v40  ;;  %v321_v43 = vshrl.u32 %v320_v41, 23  ;;  %v2322_v52 = vand.u32 31, %v175_v46  ;;  %v633_v54 = vor.u32 8388608, %v632_v45  ;;  %v73_v41 = vpop.permute.xlu2 %72 }
  0x94   :  { %v134_v44 = vpop.f32.mrf.mxu2  ;;  %v2338_v12 = vshrl.u32 %v175_v46, 5 }
  0x95   :  { %v635_v48 = vadd.s32 1, %v2135_v42  ;;  %v2129_v49 = vadd.s32 4294967169, %v321_v43  ;;  %v2328_v61 = vsub.s32 32, %v2322_v52  ;;  %v2330_v63 = vadd.f32 %v134_v44, %v63_v59 }
  0x96   :  { %v128_v50 = vpop.f32.mrf.mxu0  ;;  %v2332_v2 = vshll.u32 %v633_v54, 8  ;;  %v2342_v13 = vshll.u32 %v2189_v5, %v2322_v52  ;;  %v2346_v14 = vshll.u32 %v2190_v7, %v2322_v52 }
  0x97   :  { %v2320_v51 = vadd.f32 %v128_v50, %v53_v47  ;;  %vm636_vm2 = vcmp.gt.s32.totalorder %v635_v48, 0  ;;  %v327_v53 = vadd.s32 1, %v2129_v49  ;;  %v2352_v16 = vshrl.u32 %v2190_v7, %v2328_v61 }
  0x98   :  { %v637_v55 = vsel %vm636_vm2, %v635_v48, 0  ;;  %v1399_v17 = vmax.f32 %v2330_v63, 0.0  ;;  %v2356_v19 = vand.u32 65535, %v2332_v2  ;;  %v675_v35 = vshrl.u32 %v2332_v2, 16 }
  0x99   :  { %v474_v56 = vand.u32 2139095040, %v2320_v51  ;;  %v639_v57 = vand.u32 31, %v637_v55  ;;  %vm328_vm3 = vcmp.gt.s32.totalorder %v327_v53, 0  ;;  %v2348_v15 = vshrl.u32 %v637_v55, 5 }
  0x9a   :  { %v329_v3 = vsel %vm328_vm3, %v327_v53, 0 }
  0x9b   :  { %v475_v60 = vshrl.u32 %v474_v56, 23  ;;  %v640_v62 = vsub.s32 32, %v639_v57  ;;  %v651_v6 = vshll.u32 %v2189_v5, %v639_v57  ;;  %v654_v9 = vshll.u32 %v2190_v7, %v639_v57 }
  0x9c   :  { %v137_v0 = vpop.f32.mrf.mxu2  ;;  %v2358_v20 = vand.u32 31, %v329_v3  ;;  %v642_v22 = vshll.u32 %v2192_v21, %v639_v57  ;;  %v645_v25 = vshll.u32 %v2193_v23, %v639_v57  ;;  %vm660_vm5 = vcmp.lt.s32.totalorder %v2348_v15, 4 }
  0x9d   :  { %v2132_v4 = vadd.s32 4294967169, %v475_v60  ;;  %v652_v8 = vshrl.u32 %v2190_v7, %v640_v62  ;;  %v655_v11 = vshrl.u32 %v2191_v10, %v640_v62  ;;  %v643_v24 = vshrl.u32 %v2193_v23, %v640_v62 }
  0x9e   :  { %v646_v30 = vshrl.u32 %v2194_v29, %v640_v62  ;;  %v2365_v32 = vshrl.u32 %v329_v3, 5  ;;  %v2370_v37 = vadd.f32 %v137_v0, %v68_v31  ;;  %v641_v42 = vshrl.u32 %v2192_v21, %v640_v62 }
  0x9f   :  { %v481_v18 = vadd.s32 1, %v2132_v4  ;;  %v653_v26 = vor.u32 %v652_v8, %v651_v6  ;;  %v656_v27 = vor.u32 %v655_v11, %v654_v9  ;;  %v648_v43 = vshll.u32 %v2194_v29, %v639_v57 }
  0xa0   :  { %v2375_v44 = vsub.s32 32, %v2358_v20  ;;  %v644_v45 = vor.u32 %v643_v24, %v642_v22  ;;  %v647_v46 = vor.u32 %v646_v30, %v645_v25  ;;  %v649_v47 = vshrl.u32 %v2189_v5, %v640_v62 }
  0xa1   :  { %vm482_vm4 = vcmp.gt.s32.totalorder %v481_v18, 0  ;;  %v666_v48 = vsel %vm660_vm5, %v653_v26, 920167782  ;;  %v670_v49 = vsel %vm660_vm5, %v656_v27, 1326507024  ;;  %vm657_vm6 = vcmp.lt.s32.totalorder %v2348_v15, 1 }
  0xa2   :  { %v483_v33 = vsel %vm482_vm4, %v481_v18, 0  ;;  %v650_v56 = vor.u32 %v649_v47, %v648_v43  ;;  %vm658_vm7 = vcmp.lt.s32.totalorder %v2348_v15, 2  ;;  %vm659_vm8 = vcmp.lt.s32.totalorder %v2348_v15, 3 }
  0xa3   :  { %v2368_v36 = vand.u32 31, %v483_v33  ;;  %v2382_v50 = vshrl.u32 %v483_v33, 5  ;;  %v665_v62 = vsel %vm657_vm6, %v644_v45, %v647_v46  ;;  %v661_v8 = vsel %vm657_vm6, %v641_v42, %v644_v45 }
  0xa4   :  { %v140_v40 = vpop.f32.mrf.mxu2  ;;  %v662_v60 = vsel %vm660_vm5, %v650_v56, 2102212464  ;;  %v667_v0 = vsel %vm659_vm8, %v650_v56, %v666_v48  ;;  %v669_v3 = vsel %vm657_vm6, %v647_v46, %v650_v56  ;;  %v671_v18 = vsel %vm659_vm8, %v653_v26, %v670_v49 }
  0xa5   :  { %v2385_v53 = vsub.s32 32, %v2368_v36  ;;  %v497_v54 = vshll.u32 %v2189_v5, %v2368_v36  ;;  %v141_v55 = vadd.f32 %v140_v40, %v73_v41  ;;  %v500_v6 = vshll.u32 %v2190_v7, %v2368_v36 }
  0xa6   :  { %v668_v9 = vsel %vm658_vm7, %v665_v62, %v667_v0  ;;  %v663_v11 = vsel %vm659_vm8, %v647_v46, %v662_v60  ;;  %v2406_v25 = vshrl.u32 %v2190_v7, %v2375_v44  ;;  %v1400_v30 = vmax.f32 %v2370_v37, 0.0 }
  0xa7   :  { %v498_v57 = vshrl.u32 %v2190_v7, %v2385_v53  ;;  %v501_v59 = vshrl.u32 %v2191_v10, %v2385_v53  ;;  %v698_v22 = vand.u32 65535, %v668_v9  ;;  %v699_v24 = vshrl.u32 %v668_v9, 16 }
  0xa8   :  { %v672_v33 = vsel %vm658_vm7, %v669_v3, %v671_v18  ;;  %vm506_vm9 = vcmp.lt.s32.totalorder %v2382_v50, 4  ;;  %v1401_v26 = vmax.f32 %v141_v55, 0.0  ;;  %v2415_v43 = vsel %vm658_vm7, %v661_v8, %v663_v11 }
  0xa9   :  { %v2398_v4 = vor.u32 %v498_v57, %v497_v54  ;;  %v502_v27 = vor.u32 %v501_v59, %v500_v6  ;;  %v676_v41 = vand.u32 65535, %v672_v33  ;;  %v677_v42 = vshrl.u32 %v672_v33, 16 }
  0xaa   :  { %v701_v45 = vmul.u32 %v699_v24, %v2356_v19  ;;  %v702_v46 = vmul.u32 %v698_v22, %v675_v35  ;;  %v700_v54 = vmul.u32 %v698_v22, %v2356_v19  ;;  %v703_v15 = vmul.u32 %v699_v24, %v675_v35 }
  0xab   :  { %v2421_v37 = vsel %vm506_vm9, %v2398_v4, 920167782  ;;  %v679_v48 = vmul.u32 %v677_v42, %v2356_v19  ;;  %v680_v49 = vmul.u32 %v676_v41, %v675_v35  ;;  %v678_v56 = vmul.u32 %v676_v41, %v2356_v19 }
  0xac   :  { %v143_v31 = vpop.f32.mrf.mxu2  ;;  %v704_v55 = vshll.u32 %v701_v45, 16  ;;  %v681_v57 = vmul.u32 %v677_v42, %v675_v35  ;;  %v471_v60 = vand.u32 2147483647, %v2320_v51  ;;  %v705_v62 = vshrl.u32 %v701_v45, 16 }
  0xad   :  { %v144_v40 = vadd.f32 %v143_v31, %v2325_v58  ;;  %v516_v58 = vsel %vm506_vm9, %v502_v27, 1326507024  ;;  %v682_v59 = vshll.u32 %v679_v48, 16  ;;  %v706_v0 = vshll.u32 %v702_v46, 16 }
  0xae   :  { %vm708_vm10 = vc.u32 %v700_v54, %v704_v55  ;;  %v710_v3 = vadd.s32 %v704_v55, %v700_v54  ;;  %v684_v6 = vshll.u32 %v680_v49, 16  ;;  %v683_v11 = vshrl.u32 %v679_v48, 16 }
  0xaf   :  { %v1402_v47 = vmax.f32 %v144_v40, 0.0  ;;  %vm686_vm11 = vc.u32 %v678_v56, %v682_v59  ;;  %v688_v8 = vadd.s32 %v682_v59, %v678_v56  ;;  %v709_v9 = vsel %vm708_vm10, 1, %v2188_v1 }
  0xb0   :  { %v687_v18 = vsel %vm686_vm11, 1, %v2188_v1  ;;  %v711_v22 = vadd.s32 %v709_v9, %v703_v15  ;;  %vm712_vm12 = vc.u32 %v710_v3, %v706_v0  ;;  %v478_v24 = vand.u32 8388607, %v471_v60 }
  0xb1   :  { %1460 = vmatpush.msra.mxu1 %v1402_v47  ;;  %2170 = vmatpush.msra.mxu3 %v1402_v47  ;;  %v689_v19 = vadd.s32 %v687_v18, %v681_v57  ;;  %vm690_vm13 = vc.u32 %v688_v8, %v684_v6  ;;  %v713_v35 = vsel %vm712_vm12, 1, %v2188_v1  ;;  %v707_v31 = vshrl.u32 %v702_v46, 16 }
  0xb2   :  { %v691_v27 = vsel %vm690_vm13, 1, %v2188_v1  ;;  %v715_v33 = vadd.s32 %v713_v35, %v711_v22  ;;  %v488_v40 = vshll.u32 %v2192_v21, %v2368_v36  ;;  %v479_v41 = vor.u32 8388608, %v478_v24 }
  0xb3   :  { %1461 = vmatpush.msra.mxu1 %v1401_v26  ;;  %2171 = vmatpush.msra.mxu3 %v1401_v26  ;;  %v489_v42 = vshrl.u32 %v2193_v23, %v2385_v53  ;;  %v491_v26 = vshll.u32 %v2193_v23, %v2368_v36  ;;  %v492_v46 = vshrl.u32 %v2194_v29, %v2385_v53  ;;  %v685_v63 = vshrl.u32 %v680_v49, 16 }
  0xb4   :  { %v716_v45 = vadd.s32 %v715_v33, %v705_v62  ;;  %v494_v47 = vshll.u32 %v2194_v29, %v2368_v36  ;;  %v495_v48 = vshrl.u32 %v2189_v5, %v2385_v53  ;;  %v2451_v54 = vadd.s32 %v710_v3, %v706_v0 }
  0xb5   :  { %1462 = vmatpush.msra.mxu1 %v1400_v30  ;;  %2172 = vmatpush.msra.mxu3 %v1400_v30  ;;  %v693_v30 = vadd.s32 %v691_v27, %v689_v19  ;;  %v490_v15 = vor.u32 %v489_v42, %v488_v40  ;;  %v493_v56 = vor.u32 %v492_v46, %v491_v26  ;;  %vm503_vm14 = vcmp.lt.s32.totalorder %v2382_v50, 1 }
  0xb6   :  { %v717_v55 = vadd.s32 %v716_v45, %v707_v31  ;;  %v496_v57 = vor.u32 %v495_v48, %v494_v47  ;;  %vm504_vm15 = vcmp.lt.s32.totalorder %v2382_v50, 2  ;;  %vm505_vm0 = vcmp.lt.s32.totalorder %v2382_v50, 3 }
  0xb7   :  { %1463 = vmatpush.msra.mxu1 %v1399_v17  ;;  %2173 = vmatpush.msra.mxu3 %v1399_v17  ;;  %v694_v17 = vadd.s32 %v693_v30, %v683_v11  ;;  %v2458_v36 = vshll.u32 %v479_v41, 8  ;;  %v511_v49 = vsel %vm503_vm14, %v490_v15, %v493_v56  ;;  %v517_v3 = vsel %vm505_vm0, %v2398_v4, %v516_v58 }
  0xb8   :  { %v721_v62 = vadd.s32 1, %v717_v55  ;;  %v513_v0 = vsel %vm505_vm0, %v496_v57, %v2421_v37  ;;  %v347_v6 = vshrl.u32 %v2191_v10, %v2375_v44  ;;  %v718_v8 = vmul.u32 %v2332_v2, %v2415_v43 }
  0xb9   :  { %v2454_v59 = vadd.s32 %v694_v17, %v685_v63  ;;  %v514_v9 = vsel %vm504_vm15, %v511_v49, %v513_v0  ;;  %v487_v37 = vshrl.u32 %v2192_v21, %v2385_v53  ;;  %v508_v18 = vsel %vm506_vm9, %v496_v57, 2102212464 }
  0xba   :  { %v515_v4 = vsel %vm503_vm14, %v493_v56, %v496_v57  ;;  %v520_v43 = vand.u32 65535, %v2458_v36  ;;  %v521_v22 = vshrl.u32 %v2458_v36, 16  ;;  %v544_v24 = vand.u32 65535, %v514_v9 }
  0xbb   :  { %vm720_vm1 = vc.u32 %v2454_v59, %v2451_v54  ;;  %v518_v2 = vsel %vm504_vm15, %v515_v4, %v517_v3  ;;  %v545_v27 = vshrl.u32 %v514_v9, 16  ;;  %v2488_v53 = vshrl.u32 %v2191_v10, %v2328_v61 }
  0xbc   :  { %v722_v11 = vsel %vm720_vm1, %v721_v62, %v717_v55  ;;  %v522_v19 = vand.u32 65535, %v518_v2  ;;  %v523_v35 = vshrl.u32 %v518_v2, 16  ;;  %v343_v31 = vshll.u32 %v2189_v5, %v2358_v20 }
  0xbd   :  { %v723_v58 = vadd.s32 %v722_v11, %v718_v8  ;;  %v346_v33 = vshll.u32 %v2190_v7, %v2358_v20  ;;  %v507_v30 = vsel %vm503_vm14, %v487_v37, %v490_v15  ;;  %v509_v41 = vsel %vm505_vm0, %v493_v56, %v508_v18 }
  0xbe   :  { %v525_v42 = vmul.u32 %v523_v35, %v520_v43  ;;  %v526_v26 = vmul.u32 %v522_v19, %v521_v22  ;;  %v2499_v45 = vor.u32 %v2406_v25, %v343_v31  ;;  %vm352_vm2 = vcmp.lt.s32.totalorder %v2365_v32, 4 }
  0xbf   :  { %v724_v40 = vadd.s32 536870912, %v723_v58  ;;  %v547_v47 = vmul.u32 %v545_v27, %v520_v43  ;;  %v348_v48 = vor.u32 %v347_v6, %v346_v33  ;;  %v524_v63 = vmul.u32 %v522_v19, %v520_v43 }
  0xc0   :  { %v528_v17 = vshll.u32 %v525_v42, 16  ;;  %v548_v55 = vmul.u32 %v544_v24, %v521_v22  ;;  %v2507_v15 = vsel %vm504_vm15, %v507_v30, %v509_v41  ;;  %v546_v56 = vmul.u32 %v544_v24, %v520_v43 }
  0xc1   :  { %v2502_v46 = vshrl.u32 %v724_v40, 30  ;;  %v550_v62 = vshll.u32 %v547_v47, 16  ;;  %v527_v49 = vmul.u32 %v523_v35, %v521_v22  ;;  %v530_v25 = vshll.u32 %v526_v26, 16 }
  0xc2   :  { %vm532_vm3 = vc.u32 %v524_v63, %v528_v17  ;;  %v534_v0 = vadd.s32 %v528_v17, %v524_v63  ;;  %v549_v6 = vmul.u32 %v545_v27, %v521_v22  ;;  %v552_v11 = vshll.u32 %v548_v55, 16 }
  0xc3   :  { %v726_v57 = vshll.u32 %v2502_v46, 30  ;;  %v533_v8 = vsel %vm532_vm3, 1, %v2188_v1  ;;  %vm554_vm4 = vc.u32 %v546_v56, %v550_v62  ;;  %v317_v4 = vand.u32 2147483647, %v2314_v38 }
  0xc4   :  { %v535_v9 = vadd.s32 %v533_v8, %v527_v49  ;;  %vm536_vm5 = vc.u32 %v534_v0, %v530_v25  ;;  %v555_v37 = vsel %vm554_vm4, 1, %v2188_v1  ;;  %v529_v2 = vshrl.u32 %v525_v42, 16 }
  0xc5   :  { %v2509_v3 = vsub.s32 %v723_v58, %v726_v57  ;;  %v537_v18 = vsel %vm536_vm5, 1, %v2188_v1  ;;  %v556_v43 = vadd.s32 %v550_v62, %v546_v56  ;;  %v557_v19 = vadd.s32 %v555_v37, %v549_v6 }
  0xc6   :  { %v539_v58 = vadd.s32 %v537_v18, %v535_v9  ;;  %v2519_v22 = vor.u32 %v2352_v16, %v2342_v13  ;;  %v358_v35 = vsel %vm352_vm2, %v2499_v45, 920167782  ;;  %v362_v24 = vsel %vm352_vm2, %v348_v48, 1326507024 }
  0xc7   :  { %vm728_vm6 = vcmp.lt.s32.totalorder %v2509_v3, 0  ;;  %v729_v50 = vsub.s32 0, %v2509_v3  ;;  %v531_v33 = vshrl.u32 %v526_v26, 16  ;;  %vm558_vm7 = vc.u32 %v556_v43, %v552_v11 }
  0xc8   :  { %v540_v40 = vadd.s32 %v539_v58, %v529_v2  ;;  %v719_v30 = vadd.s32 %v2451_v54, %v2454_v59  ;;  %v559_v41 = vsel %vm558_vm7, 1, %v2188_v1  ;;  %v564_v13 = vmul.u32 %v2458_v36, %v2507_v15 }
  0xc9   :  { %v730_v27 = vsel %vm728_vm6, %v729_v50, %v2509_v3  ;;  %v324_v16 = vand.u32 8388607, %v317_v4  ;;  %v551_v48 = vshrl.u32 %v547_v47, 16  ;;  %v561_v17 = vadd.s32 %v559_v41, %v557_v19 }
  0xca   :  { %v731_v31 = vclz %v730_v27  ;;  %v2534_v63 = vadd.s32 %v540_v40, %v531_v33  ;;  %vm627_vm8 = vcmp.lt.s32.totalorder %v2311_v34, 0  ;;  %v334_v26 = vshll.u32 %v2192_v21, %v2358_v20 }
  0xcb   :  { %v335_v54 = vshrl.u32 %v2193_v23, %v2375_v44  ;;  %v337_v59 = vshll.u32 %v2193_v23, %v2358_v20  ;;  %v338_v36 = vshrl.u32 %v2194_v29, %v2375_v44  ;;  %v553_v57 = vshrl.u32 %v548_v55, 16 }
  0xcc   :  { %v2136_v42 = vadd.s32 4294967294, %v731_v31  ;;  %v2545_v15 = vadd.s32 %v556_v43, %v552_v11  ;;  %v562_v47 = vadd.s32 %v561_v17, %v551_v48  ;;  %v325_v62 = vor.u32 8388608, %v324_v16 }
  0xcd   :  { %v2547_v49 = vor.u32 %v335_v54, %v334_v26  ;;  %v2549_v25 = vor.u32 %v338_v36, %v337_v59  ;;  %vm2553_vm10 = vcmp.le.f32.partialorder %v625_v39, 0.7853982  ;;  %v749_v9 = vsub.s32 4, %v2502_v46 }
  0xce   :  { %vm2137_vm9 = vcmp.lt.s32.totalorder %v2136_v42, 0  ;;  %v563_v55 = vadd.s32 %v562_v47, %v553_v57  ;;  %vm566_vm11 = vc.u32 %v2534_v63, %v2545_v15  ;;  %v340_v37 = vshll.u32 %v2194_v29, %v2358_v20 }
  0xcf   :  { %v734_v56 = vsel %vm2137_vm9, 0, %v2136_v42  ;;  %v341_v50 = vshrl.u32 %v2189_v5, %v2375_v44  ;;  %vm349_vm12 = vcmp.lt.s32.totalorder %v2365_v32, 1  ;;  %vm351_vm13 = vcmp.lt.s32.totalorder %v2365_v32, 3 }
  0xd0   :  { %v735_v8 = vsub.s32 32, %v734_v56  ;;  %v739_v6 = vsub.s32 4294967266, %v734_v56  ;;  %v736_v11 = vshll.u32 %v2509_v3, %v734_v56  ;;  %v567_v2 = vadd.s32 1, %v563_v55 }
  0xd1   :  { %v342_v58 = vor.u32 %v341_v50, %v340_v37  ;;  %v357_v3 = vsel %vm349_vm12, %v2547_v49, %v2549_v25  ;;  %v2571_v43 = vshll.u32 %v325_v62, 8  ;;  %v363_v31 = vsel %vm351_vm13, %v2499_v45, %v362_v24 }
  0xd2   :  { %v737_v39 = vshrl.u32 %v719_v30, %v735_v8  ;;  %v740_v18 = vadd.s32 127, %v739_v6  ;;  %v568_v27 = vsel %vm566_vm11, %v567_v2, %v563_v55  ;;  %v194_v33 = vor.u32 %v2488_v53, %v2346_v14 }
  0xd3   :  { %v569_v40 = vadd.s32 %v568_v27, %v564_v13  ;;  %v359_v30 = vsel %vm351_vm13, %v342_v58, %v358_v35  ;;  %v361_v41 = vsel %vm349_vm12, %v2549_v25, %v342_v58  ;;  %v750_v48 = vsel %vm627_vm8, %v749_v9, %v2502_v46 }
  0xd4   :  { %v738_v19 = vor.u32 %v737_v39, %v736_v11  ;;  %v741_v20 = vshll.u32 %v740_v18, 23  ;;  %vm350_vm14 = vcmp.lt.s32.totalorder %v2365_v32, 2  ;;  %v366_v35 = vand.u32 65535, %v2571_v43 }
  0xd5   :  { %v570_v45 = vadd.s32 536870912, %v569_v40  ;;  %v360_v14 = vsel %vm350_vm14, %v357_v3, %v359_v30  ;;  %v364_v53 = vsel %vm350_vm14, %v361_v41, %v363_v31  ;;  %v367_v13 = vshrl.u32 %v2571_v43, 16 }
  0xd6   :  { %v742_v16 = vor.u32 4788187, %v741_v20  ;;  %v745_v42 = vcvt.s32.f32 %v738_v19  ;;  %v368_v17 = vand.u32 65535, %v364_v53  ;;  %v369_v26 = vshrl.u32 %v364_v53, 16 }
  0xd7   :  { %v752_v54 = vsel %vm2553_vm10, 0, %v750_v48  ;;  %v2595_v46 = vshrl.u32 %v570_v45, 30  ;;  %vm198_vm15 = vcmp.lt.s32.totalorder %v2338_v12, 4  ;;  %v391_v8 = vshrl.u32 %v360_v14, 16 }
  0xd8   :  { %v743_v24 = vand.u32 2147483647, %v742_v16  ;;  %v371_v36 = vmul.u32 %v369_v26, %v366_v35  ;;  %v2598_v57 = vmul.u32 %v368_v17, %v367_v13  ;;  %v2603_v47 = vsel %vm198_vm15, %v2519_v22, 920167782 }
  0xd9   :  { %v2607_v56 = vsel %vm198_vm15, %v194_v33, 1326507024  ;;  %v572_v62 = vshll.u32 %v2595_v46, 30  ;;  %v2610_v9 = vand.u32 3, %v752_v54  ;;  %v370_v55 = vmul.u32 %v368_v17, %v366_v35 }
  0xda   :  { %v746_v59 = vmul.f32 %v745_v42, %v743_v24  ;;  %v374_v11 = vshll.u32 %v371_v36, 16  ;;  %v333_v50 = vshrl.u32 %v2192_v21, %v2375_v44  ;;  %v354_v39 = vsel %vm352_vm2, %v342_v58, 2102212464 }
  0xdb   :  { %v2612_v37 = vsub.s32 %v569_v40, %v572_v62  ;;  %v390_v18 = vand.u32 65535, %v360_v14  ;;  %v376_v3 = vshll.u32 %v2598_v57, 16  ;;  %v393_v27 = vmul.u32 %v391_v8, %v366_v35 }
  0xdc   :  { %v747_v6 = vxor.u32 2147483648, %v746_v59  ;;  %vm378_vm0 = vc.u32 %v370_v55, %v374_v11  ;;  %v380_v19 = vadd.s32 %v374_v11, %v370_v55  ;;  %v373_v31 = vmul.u32 %v369_v26, %v367_v13 }
  0xdd   :  { %vm574_vm1 = vcmp.lt.s32.totalorder %v2612_v37, 0  ;;  %v575_v44 = vsub.s32 0, %v2612_v37  ;;  %v379_v33 = vsel %vm378_vm0, 1, %v2188_v1  ;;  %v565_v40 = vadd.s32 %v2545_v15, %v2534_v63 }
  0xde   :  { %v748_v2 = vsel %vm627_vm8, %v747_v6, %v746_v59  ;;  %vm382_vm2 = vc.u32 %v380_v19, %v376_v3  ;;  %v353_v0 = vsel %vm349_vm12, %v333_v50, %v2547_v49  ;;  %v394_v41 = vmul.u32 %v390_v18, %v367_v13 }
  0xdf   :  { %v2624_v20 = vsel %vm2553_vm10, %v2311_v34, %v748_v2  ;;  %v576_v30 = vsel %vm574_vm1, %v575_v44, %v2612_v37  ;;  %v381_v45 = vadd.s32 %v379_v33, %v373_v31  ;;  %v355_v14 = vsel %vm351_vm13, %v2549_v25, %v354_v39 }
  0xe0   :  { %v753_v58 = vmul.f32 %v2624_v20, %v2624_v20  ;;  %v577_v48 = vclz %v576_v30  ;;  %v383_v53 = vsel %vm382_vm2, 1, %v2188_v1  ;;  %v392_v24 = vmul.u32 %v390_v18, %v366_v35 }
  0xe1   :  { %v396_v17 = vshll.u32 %v393_v27, 16  ;;  %v385_v54 = vadd.s32 %v383_v53, %v381_v45  ;;  %v375_v59 = vshrl.u32 %v371_v36, 16  ;;  %v398_v62 = vshll.u32 %v394_v41, 16 }
  0xe2   :  { %v754_v16 = vmul.f32 -0.001358992, %v753_v58  ;;  %v761_v42 = vmul.f32 -0.00019511016, %v753_v58  ;;  %v2133_v26 = vadd.s32 4294967294, %v577_v48  ;;  %v395_v11 = vmul.u32 %v391_v8, %v367_v13 }
  0xe3   :  { %vm400_vm3 = vc.u32 %v392_v24, %v396_v17  ;;  %v402_v49 = vadd.s32 %v396_v17, %v392_v24  ;;  %v386_v2 = vadd.s32 %v385_v54, %v375_v59  ;;  %v356_v3 = vsel %vm350_vm14, %v353_v0, %v355_v14 }
  0xe4   :  { %v755_v63 = vadd.f32 0.041655596, %v754_v16  ;;  %v762_v15 = vadd.f32 0.008332121, %v761_v42  ;;  %vm2134_vm4 = vcmp.lt.s32.totalorder %v2133_v26, 0  ;;  %v401_v25 = vsel %vm400_vm3, 1, %v2188_v1 }
  0xe5   :  { %v580_v50 = vsel %vm2134_vm4, 0, %v2133_v26  ;;  %vm404_vm5 = vc.u32 %v402_v49, %v398_v62  ;;  %vm771_vm6 = vcmp.eq.s32.totalorder %v2610_v9, 0  ;;  %v377_v19 = vshrl.u32 %v2598_v57, 16 }
  0xe6   :  { %v756_v6 = vmul.f32 %v755_v63, %v753_v58  ;;  %v763_v55 = vmul.f32 %v762_v15, %v753_v58  ;;  %v581_v18 = vsub.s32 32, %v580_v50  ;;  %v585_v36 = vsub.s32 4294967266, %v580_v50 }
  0xe7   :  { %v403_v44 = vadd.s32 %v401_v25, %v395_v11  ;;  %v405_v31 = vsel %vm404_vm5, 1, %v2188_v1  ;;  %vm770_vm7 = vcmp.lt.s32.totalorder %v2610_v9, 2  ;;  %v582_v33 = vshll.u32 %v2612_v37, %v580_v50 }
  0xe8   :  { %v757_v39 = vadd.f32 -0.4999988, %v756_v6  ;;  %v764_v35 = vadd.f32 -0.16666654, %v763_v55  ;;  %v583_v30 = vshrl.u32 %v565_v40, %v581_v18  ;;  %vm768_vm8 = vweird.f32 %v2311_v34 }
  0xe9   :  { %v586_v16 = vadd.s32 127, %v585_v36  ;;  %v2650_v32 = vadd.s32 %v386_v2, %v377_v19  ;;  %v397_v0 = vshrl.u32 %v393_v27, 16  ;;  %v407_v42 = vadd.s32 %v405_v31, %v403_v44 }
  0xea   :  { %v758_v13 = vmul.f32 %v757_v39, %v753_v58  ;;  %v765_v8 = vmul.f32 %v764_v35, %v753_v58  ;;  %vm473_vm9 = vcmp.lt.s32.totalorder %v2320_v51, 0  ;;  %v584_v57 = vor.u32 %v583_v30, %v582_v33 }
  0xeb   :  { %v163_v14 = vand.u32 2147483647, %v2308_v28  ;;  %v587_v58 = vshll.u32 %v586_v16, 23  ;;  %v399_v53 = vshrl.u32 %v394_v41, 16  ;;  %v2654_v24 = vadd.s32 %v402_v49, %v398_v62 }
  0xec   :  { %v759_v48 = vadd.f32 1.0, %v758_v13  ;;  %v766_v45 = vadd.f32 1.0, %v765_v8  ;;  %v408_v37 = vadd.s32 %v407_v42, %v397_v0  ;;  %vm774_vm10 = vcmp.eq.s32.totalorder %v2610_v9, 2 }
  0xed   :  { %v410_v27 = vmul.u32 %v2571_v43, %v356_v3  ;;  %v588_v63 = vor.u32 4788187, %v587_v58  ;;  %v595_v15 = vsub.s32 4, %v2595_v46  ;;  %vm412_vm11 = vc.u32 %v2650_v32, %v2654_v24 }
  0xee   :  { %v767_v40 = vmul.f32 %v766_v45, %v2624_v20  ;;  %v775_v17 = vxor.u32 2147483648, %v759_v48  ;;  %v409_v26 = vadd.s32 %v408_v37, %v399_v53  ;;  %v591_v41 = vcvt.s32.f32 %v584_v57 }
  0xef   :  { %v170_v62 = vand.u32 8388607, %v163_v14  ;;  %v589_v49 = vand.u32 2147483647, %v588_v63  ;;  %v183_v6 = vshll.u32 %v2193_v23, %v2322_v52  ;;  %v184_v43 = vshrl.u32 %v2194_v29, %v2328_v61 }
  0xf0   :  { %v772_v54 = vxor.u32 2147483648, %v767_v40  ;;  %v776_v59 = vsel %vm774_vm10, %v775_v17, %v767_v40  ;;  %v413_v20 = vadd.s32 1, %v409_v26  ;;  %v181_v11 = vshrl.u32 %v2193_v23, %v2328_v61 }
  0xf1   :  { %v186_v50 = vshll.u32 %v2194_v29, %v2322_v52  ;;  %v187_v2 = vshrl.u32 %v2189_v5, %v2328_v61  ;;  %v592_v39 = vmul.f32 %v591_v41, %v589_v49  ;;  %v2678_v18 = vor.u32 %v184_v43, %v183_v6 }
  0xf2   :  { %v773_v55 = vsel %vm771_vm6, %v759_v48, %v772_v54  ;;  %v414_v35 = vsel %vm412_vm11, %v413_v20, %v409_v26  ;;  %v180_v19 = vshll.u32 %v2192_v21, %v2322_v52  ;;  %v596_v9 = vsel %vm473_vm9, %v595_v15, %v2595_v46 }
  0xf3   :  { %v777_v25 = vsel %vm770_vm7, %v773_v55, %v776_v59  ;;  %v415_v36 = vadd.s32 %v414_v35, %v410_v27  ;;  %v188_v44 = vor.u32 %v187_v2, %v186_v50  ;;  %v593_v31 = vxor.u32 2147483648, %v592_v39 }
  0xf4   :  { %v778_v3 = vsel %vm768_vm8, nan, %v777_v25  ;;  %v171_v13 = vor.u32 8388608, %v170_v62  ;;  %vm195_vm12 = vcmp.lt.s32.totalorder %v2338_v12, 1  ;;  %v2688_v33 = vor.u32 %v181_v11, %v180_v19 }
  0xf5   :  { %1464 = vmatpush.msra.mxu1 %v778_v3  ;;  %2174 = vmatpush.msra.mxu3 %v778_v3  ;;  %v416_v8 = vadd.s32 536870912, %v415_v36  ;;  %vm197_vm13 = vcmp.lt.s32.totalorder %v2338_v12, 3  ;;  %v207_v34 = vsel %vm195_vm12, %v2678_v18, %v188_v44  ;;  %vm2696_vm14 = vcmp.le.f32.partialorder %v471_v60, 0.7853982 }
  0xf6   :  { %v594_v46 = vsel %vm473_vm9, %v593_v31, %v592_v39  ;;  %vm196_vm0 = vcmp.lt.s32.totalorder %v2338_v12, 2  ;;  %v209_v30 = vsel %vm197_vm13, %v2519_v22, %v2607_v56  ;;  %v598_v42 = vsel %vm2696_vm14, 0, %v596_v9 }
  0xf7   :  { %v597_v16 = vsel %vm2696_vm14, %v2320_v51, %v594_v46  ;;  %v2710_v0 = vshrl.u32 %v416_v8, 30  ;;  %v210_v60 = vsel %vm196_vm0, %v207_v34, %v209_v30  ;;  %v2716_v45 = vshll.u32 %v171_v13, 8 }
  0xf8   :  { %v599_v48 = vmul.f32 %v597_v16, %v597_v16  ;;  %v203_v22 = vsel %vm195_vm12, %v2688_v33, %v2678_v18  ;;  %v205_v56 = vsel %vm197_vm13, %v188_v44, %v2603_v47  ;;  %v215_v58 = vshrl.u32 %v210_v60, 16 }
  0xf9   :  { %v418_v57 = vshll.u32 %v2710_v0, 30  ;;  %v214_v40 = vand.u32 65535, %v210_v60  ;;  %v2726_v17 = vand.u32 3, %v598_v42  ;;  %v212_v63 = vand.u32 65535, %v2716_v45 }
  0xfa   :  { %v600_v53 = vmul.f32 -0.001358992, %v599_v48  ;;  %v607_v37 = vmul.f32 -0.00019511016, %v599_v48  ;;  %v206_v54 = vsel %vm196_vm0, %v203_v22, %v205_v56  ;;  %v213_v59 = vshrl.u32 %v2716_v45, 16 }
  0xfb   :  { %v419_v27 = vsub.s32 %v415_v36, %v418_v57  ;;  %v217_v62 = vmul.u32 %v215_v58, %v212_v63  ;;  %v216_v43 = vmul.u32 %v214_v40, %v212_v63  ;;  %v236_v55 = vand.u32 65535, %v206_v54 }
  0xfc   :  { %v601_v15 = vadd.f32 0.041655596, %v600_v53  ;;  %v608_v26 = vadd.f32 0.008332121, %v607_v37  ;;  %v2732_v20 = vmul.u32 %v214_v40, %v213_v59  ;;  %v237_v11 = vshrl.u32 %v206_v54, 16 }
  0xfd   :  { %vm420_vm1 = vcmp.lt.s32.totalorder %v419_v27, 0  ;;  %v421_v41 = vsub.s32 0, %v419_v27  ;;  %vm620_vm2 = vcmp.eq.s32.totalorder %v2726_v17, 2  ;;  %v220_v39 = vshll.u32 %v217_v62, 16 }
  0xfe   :  { %v602_v47 = vmul.f32 %v601_v15, %v599_v48  ;;  %v609_v49 = vmul.f32 %v608_v26, %v599_v48  ;;  %vm617_vm3 = vcmp.eq.s32.totalorder %v2726_v17, 0  ;;  %v411_v35 = vadd.s32 %v2654_v24, %v2650_v32 }
  0xff   :  { %v422_v6 = vsel %vm420_vm1, %v421_v41, %v419_v27  ;;  %v200_v3 = vsel %vm198_vm15, %v188_v44, 2102212464  ;;  %v219_v36 = vmul.u32 %v215_v58, %v213_v59  ;;  %v222_v19 = vshll.u32 %v2732_v20, 16 }
 0x100   :  { %v603_v50 = vadd.f32 -0.4999988, %v602_v47  ;;  %v610_v2 = vadd.f32 -0.16666654, %v609_v49  ;;  %v423_v25 = vclz %v422_v6  ;;  %vm616_vm4 = vcmp.lt.s32.totalorder %v2726_v17, 2 }
 0x101   :  { %vm224_vm5 = vc.u32 %v216_v43, %v220_v39  ;;  %vm614_vm6 = vweird.f32 %v2320_v51  ;;  %v226_v34 = vadd.s32 %v220_v39, %v216_v43  ;;  %v239_v52 = vmul.u32 %v237_v11, %v212_v63 }
 0x102   :  { %v604_v31 = vmul.f32 %v603_v50, %v599_v48  ;;  %v611_v9 = vmul.f32 %v610_v2, %v599_v48  ;;  %v2130_v13 = vadd.s32 4294967294, %v423_v25  ;;  %v225_v8 = vsel %vm224_vm5, 1, %v2188_v1 }
 0x103   :  { %v240_v46 = vmul.u32 %v236_v55, %v213_v59  ;;  %v227_v44 = vadd.s32 %v225_v8, %v219_v36  ;;  %v221_v60 = vshrl.u32 %v217_v62, 16  ;;  %vm228_vm15 = vc.u32 %v226_v34, %v222_v19 }
 0x104   :  { %v605_v32 = vadd.f32 1.0, %v604_v31  ;;  %v612_v24 = vadd.f32 1.0, %v611_v9  ;;  %vm2131_vm7 = vcmp.lt.s32.totalorder %v2130_v13, 0  ;;  %v242_v42 = vshll.u32 %v239_v52, 16 }
 0x105   :  { %v426_v30 = vsel %vm2131_vm7, 0, %v2130_v13  ;;  %v238_v56 = vmul.u32 %v236_v55, %v212_v63  ;;  %v229_v37 = vsel %vm228_vm15, 1, %v2188_v1  ;;  %v241_v40 = vmul.u32 %v237_v11, %v213_v59 }
 0x106   :  { %v613_v48 = vmul.f32 %v612_v24, %v597_v16  ;;  %v621_v57 = vxor.u32 2147483648, %v605_v32  ;;  %v427_v22 = vsub.s32 32, %v426_v30  ;;  %v428_v58 = vshll.u32 %v419_v27, %v426_v30 }
 0x107   :  { %v431_v53 = vsub.s32 4294967266, %v426_v30  ;;  %v231_v54 = vadd.s32 %v229_v37, %v227_v44  ;;  %v244_v41 = vshll.u32 %v240_v46, 16  ;;  %vm246_vm8 = vc.u32 %v238_v56, %v242_v42 }
 0x108   :  { %v618_v15 = vxor.u32 2147483648, %v613_v48  ;;  %v429_v26 = vshrl.u32 %v411_v35, %v427_v22  ;;  %v622_v47 = vsel %vm620_vm2, %v621_v57, %v613_v48  ;;  %v248_v62 = vadd.s32 %v242_v42, %v238_v56 }
 0x109   :  { %v432_v49 = vadd.s32 127, %v431_v53  ;;  %v232_v63 = vadd.s32 %v231_v54, %v221_v60  ;;  %v247_v27 = vsel %vm246_vm8, 1, %v2188_v1  ;;  %v179_v50 = vshrl.u32 %v2192_v21, %v2328_v61 }
 0x10a   :  { %v619_v16 = vsel %vm617_vm3, %v605_v32, %v618_v15  ;;  %v430_v6 = vor.u32 %v429_v26, %v428_v58  ;;  %v249_v55 = vadd.s32 %v247_v27, %v241_v40  ;;  %vm250_vm9 = vc.u32 %v248_v62, %v244_v41 }
 0x10b   :  { %v623_v59 = vsel %vm616_vm4, %v619_v16, %v622_v47  ;;  %v433_v43 = vshll.u32 %v432_v49, 23  ;;  %v223_v2 = vshrl.u32 %v2732_v20, 16  ;;  %v251_v25 = vsel %vm250_vm9, 1, %v2188_v1 }
 0x10c   :  { %v624_v11 = vsel %vm614_vm6, nan, %v623_v59  ;;  %v243_v35 = vshrl.u32 %v239_v52, 16  ;;  %v253_v36 = vadd.s32 %v251_v25, %v249_v55  ;;  %v199_v17 = vsel %vm195_vm12, %v179_v50, %v2688_v33 }
 0x10d   :  { %1465 = vmatpush.msra.mxu1 %v624_v11  ;;  %2175 = vmatpush.msra.mxu3 %v624_v11  ;;  %v434_v39 = vor.u32 4788187, %v433_v43  ;;  %v201_v51 = vsel %vm197_vm13, %v2678_v18, %v200_v3  ;;  %v233_v19 = vadd.s32 %v232_v63, %v223_v2  ;;  %v437_v61 = vcvt.s32.f32 %v430_v6 }
 0x10e   :  { %v245_v9 = vshrl.u32 %v240_v46, 16  ;;  %v254_v20 = vadd.s32 %v253_v36, %v243_v35  ;;  %v252_v13 = vadd.s32 %v248_v62, %v244_v41  ;;  %v202_v34 = vsel %vm196_vm0, %v199_v17, %v201_v51 }
 0x10f   :  { %v435_v31 = vand.u32 2147483647, %v434_v39  ;;  %vm319_vm11 = vcmp.lt.s32.totalorder %v2314_v38, 0  ;;  %v256_v33 = vmul.u32 %v2716_v45, %v202_v34  ;;  %vm2770_vm12 = vcmp.le.f32.partialorder %v317_v4, 0.7853982 }
 0x110   :  { %v255_v52 = vadd.s32 %v254_v20, %v245_v9  ;;  %vm258_vm10 = vc.u32 %v233_v19, %v252_v13  ;;  %v441_v42 = vsub.s32 4, %v2710_v0  ;;  %v257_v11 = vadd.s32 %v252_v13, %v233_v19 }
 0x111   :  { %v438_v8 = vmul.f32 %v437_v61, %v435_v31  ;;  %vm460_vm3 = vweird.f32 %v2314_v38  ;;  %vm165_vm4 = vcmp.lt.s32.totalorder %v2308_v28, 0  ;;  %vm2789_vm5 = vcmp.le.f32.partialorder %v163_v14, 0.7853982 }
 0x112   :  { %v259_v24 = vadd.s32 1, %v255_v52  ;;  %v442_v58 = vsel %vm319_vm11, %v441_v42, %v2710_v0  ;;  %vm306_vm8 = vweird.f32 %v2308_v28  ;;  %vm1439_vm9 = vcmask 523264  }
 0x113   :  { %v439_v32 = vxor.u32 2147483648, %v438_v8  ;;  %v444_v54 = vsel %vm2770_vm12, 0, %v442_v58 }
 0x114   :  { %v260_v46 = vsel %vm258_vm10, %v259_v24, %v255_v52  ;;  %v461_v63 = vand.u32 3, %v444_v54 }
 0x115   :  { %v440_v3 = vsel %vm319_vm11, %v439_v32, %v438_v8  ;;  %v261_v44 = vadd.s32 %v260_v46, %v256_v33 }
 0x116   :  { %v443_v12 = vsel %vm2770_vm12, %v2314_v38, %v440_v3  ;;  %vm462_vm14 = vcmp.lt.s32.totalorder %v461_v63, 2  ;;  %vm463_vm1 = vcmp.eq.s32.totalorder %v461_v63, 0  ;;  %vm466_vm2 = vcmp.eq.s32.totalorder %v461_v63, 2 }
 0x117   :  { %v445_v30 = vmul.f32 %v443_v12, %v443_v12  ;;  %v262_v60 = vadd.s32 536870912, %v261_v44 }
 0x119   :  { %v446_v45 = vmul.f32 -0.001358992, %v445_v30  ;;  %v453_v48 = vmul.f32 -0.00019511016, %v445_v30  ;;  %v263_v57 = vshrl.u32 %v262_v60, 30 }
 0x11b   :  { %v447_v4 = vadd.f32 0.041655596, %v446_v45  ;;  %v454_v22 = vadd.f32 0.008332121, %v453_v48  ;;  %v264_v56 = vshll.u32 %v263_v57, 30  ;;  %v287_v46 = vsub.s32 4, %v263_v57 }
 0x11d   :  { %v448_v53 = vmul.f32 %v447_v4, %v445_v30  ;;  %v455_v37 = vmul.f32 %v454_v22, %v445_v30  ;;  %v265_v40 = vsub.s32 %v261_v44, %v264_v56  ;;  %v288_v42 = vsel %vm165_vm4, %v287_v46, %v263_v57 }
 0x11e   :  { %v290_v14 = vsel %vm2789_vm5, 0, %v288_v42 }
 0x11f   :  { %v449_v15 = vadd.f32 -0.4999988, %v448_v53  ;;  %v456_v26 = vadd.f32 -0.16666654, %v455_v37  ;;  %vm266_vm13 = vcmp.lt.s32.totalorder %v265_v40, 0  ;;  %v267_v41 = vsub.s32 0, %v265_v40 }
 0x120   :  { %v307_v53 = vand.u32 3, %v290_v14 }
 0x121   :  { %v450_v47 = vmul.f32 %v449_v15, %v445_v30  ;;  %v457_v49 = vmul.f32 %v456_v26, %v445_v30  ;;  %v268_v62 = vsel %vm266_vm13, %v267_v41, %v265_v40  ;;  %v1411_v41 = vld [vmem:[%s2992_s3] sm:$0xff] }
 0x122   :  { %v269_v27 = vclz %v268_v62  ;;  %vm309_vm6 = vcmp.eq.s32.totalorder %v307_v53, 0  ;;  %vm312_vm7 = vcmp.eq.s32.totalorder %v307_v53, 2  ;;  %vm308_vm15 = vcmp.lt.s32.totalorder %v307_v53, 2  ;;  %v1413_v62 = vld [vmem:[%s2992_s3 + $0x10] sm:$0xff] }
 0x123   :  { %v451_v16 = vadd.f32 1.0, %v450_v47  ;;  %v458_v6 = vadd.f32 1.0, %v457_v49  ;;  %v1412_v47 = vld [vmem:[%s2992_s3 + $0x8] sm:$0xff] }
 0x124   :  { %v2127_v0 = vadd.s32 4294967294, %v269_v27 }
 0x125   :  { %v459_v59 = vmul.f32 %v458_v6, %v443_v12  ;;  %v467_v43 = vxor.u32 2147483648, %v451_v16 }
 0x126   :  { %vm2128_vm0 = vcmp.lt.s32.totalorder %v2127_v0, 0 }
 0x127   :  { %v464_v55 = vxor.u32 2147483648, %v459_v59  ;;  %v272_v50 = vsel %vm2128_vm0, 0, %v2127_v0  ;;  %v468_v25 = vsel %vm466_vm2, %v467_v43, %v459_v59 }
 0x128   :  { %v273_v39 = vsub.s32 32, %v272_v50  ;;  %v277_v35 = vsub.s32 4294967266, %v272_v50  ;;  %v274_v51 = vshll.u32 %v265_v40, %v272_v50 }
 0x129   :  { %v465_v2 = vsel %vm463_vm1, %v451_v16, %v464_v55  ;;  %v1422_v16 = vpop.permute.xlu2 %1421  ;;  %v1427_v55 = vpop.permute.xlu0 %1426 }
 0x12a   :  { %v469_v36 = vsel %vm462_vm14, %v465_v2, %v468_v25  ;;  %v275_v31 = vshrl.u32 %v257_v11, %v273_v39  ;;  %v278_v61 = vadd.s32 127, %v277_v35 }
 0x12b   :  { %v470_v17 = vsel %vm460_vm3, nan, %v469_v36 }
 0x12c   :  { %1466 = vmatpush.msra.mxu1 %v470_v17  ;;  %2176 = vmatpush.msra.mxu3 %v470_v17  ;;  %v276_v9 = vor.u32 %v275_v31, %v274_v51  ;;  %v279_v20 = vshll.u32 %v278_v61, 23 }
 0x12e   :  { %v280_v8 = vor.u32 4788187, %v279_v20  ;;  %v283_v52 = vcvt.s32.f32 %v276_v9 }
 0x130   :  { %v281_v34 = vand.u32 2147483647, %v280_v8 }
 0x132   :  { %v284_v19 = vmul.f32 %v283_v52, %v281_v34 }
 0x134   :  { %v285_v13 = vxor.u32 2147483648, %v284_v19 }
 0x136   :  { %v286_v32 = vsel %vm165_vm4, %v285_v13, %v284_v19 }
 0x137   :  { %v289_v24 = vsel %vm2789_vm5, %v2308_v28, %v286_v32  ;;  %v1414_v28 = vld [vmem:[%s2992_s3 + $0x18] sm:$0xff] }
 0x138   :  { %v291_v33 = vmul.f32 %v289_v24, %v289_v24 }
 0x13a   :  { %v292_v18 = vmul.f32 -0.001358992, %v291_v33  ;;  %v299_v3 = vmul.f32 -0.00019511016, %v291_v33 }
 0x13c   :  { %v293_v12 = vadd.f32 0.041655596, %v292_v18  ;;  %v300_v44 = vadd.f32 0.008332121, %v299_v3 }
 0x13e   :  { %v294_v30 = vmul.f32 %v293_v12, %v291_v33  ;;  %v301_v60 = vmul.f32 %v300_v44, %v291_v33 }
 0x140   :  { %v295_v45 = vadd.f32 -0.4999988, %v294_v30  ;;  %v302_v48 = vadd.f32 -0.16666654, %v301_v60 }
 0x142   :  { %v296_v4 = vmul.f32 %v295_v45, %v291_v33  ;;  %v303_v22 = vmul.f32 %v302_v48, %v291_v33 }
 0x144   :  { %v297_v56 = vadd.f32 1.0, %v296_v4  ;;  %v304_v58 = vadd.f32 1.0, %v303_v22 }
 0x146   :  { %v305_v37 = vmul.f32 %v304_v58, %v289_v24  ;;  %v313_v40 = vxor.u32 2147483648, %v297_v56 }
 0x148   :  { %v310_v15 = vxor.u32 2147483648, %v305_v37  ;;  %v314_v54 = vsel %vm312_vm7, %v313_v40, %v305_v37 }
 0x14a   :  { %v311_v26 = vsel %vm309_vm6, %v297_v56, %v310_v15 }
 0x14b   :  { %v315_v57 = vsel %vm308_vm15, %v311_v26, %v314_v54 }
 0x14c   :  { %v316_v49 = vsel %vm306_vm8, nan, %v315_v57 }
 0x14d   :  { %1467 = vmatpush.msra.mxu1 %v316_v49  ;;  %2177 = vmatpush.msra.mxu3 %v316_v49 }
 0x14e   :  { %2150 = vmatmul.msk.f32.vlgmr.msra.gmra.mxu1 %vm1439_vm9, %v1411_v41  ;;  %2151 = vmatmul.msk.f32.vlgmr.msra.gmra.mxu3 %vm1439_vm9, %v1412_v47 }
 0x156   :  { %2152 = vmatmul.msk.f32.gmra.mxu3 %vm1439_vm9, %v1413_v62 }
 0x15e   :  { %2153 = vmatmul.msk.f32.gmra.mxu3 %vm1439_vm9, %v1414_v28  ;;  %vm2109_vm9 = vcmask 130048  }
 0x1cb   :  { %v1469_v6 = vpop.f32.mrf.mxu1 }
 0x1cc   :  { %v2811_v63 = vadd.f32 %v1469_v6, %v1422_v16 }
 0x1ce   :  { %v1485_v27 = vand.u32 2147483647, %v2811_v63  ;;  %v1488_v59 = vand.u32 2139095040, %v2811_v63 }
 0x1d0   :  { %v1489_v43 = vshrl.u32 %v1488_v59, 23  ;;  %v1492_v0 = vand.u32 8388607, %v1485_v27 }
 0x1d1   :  { %v1472_v2 = vpop.f32.mrf.mxu3 }
 0x1d2   :  { %v2154_v11 = vadd.s32 4294967169, %v1489_v43  ;;  %v1493_v50 = vor.u32 8388608, %v1492_v0  ;;  %v2817_v25 = vadd.f32 %v1472_v2, %v1427_v55 }
 0x1d4   :  { %v1495_v39 = vadd.s32 1, %v2154_v11  ;;  %v1639_v35 = vand.u32 2147483647, %v2817_v25  ;;  %v1642_v36 = vand.u32 2139095040, %v2817_v25  ;;  %v2821_v17 = vshll.u32 %v1493_v50, 8 }
 0x1d6   :  { %vm1496_vm10 = vcmp.gt.s32.totalorder %v1495_v39, 0  ;;  %v1643_v31 = vshrl.u32 %v1642_v36, 23  ;;  %v1646_v61 = vand.u32 8388607, %v1639_v35  ;;  %v1534_v34 = vand.u32 65535, %v2821_v17 }
 0x1d7   :  { %v1497_v51 = vsel %vm1496_vm10, %v1495_v39, 0  ;;  %v1535_v47 = vshrl.u32 %v2821_v17, 16 }
 0x1d8   :  { %v1499_v9 = vand.u32 31, %v1497_v51  ;;  %v1498_v20 = vshrl.u32 %v1497_v51, 5  ;;  %v2157_v52 = vadd.s32 4294967169, %v1643_v31  ;;  %v1647_v32 = vor.u32 8388608, %v1646_v61 }
 0x1da   :  { %v1500_v8 = vsub.s32 32, %v1499_v9  ;;  %v1502_v19 = vshll.u32 %v2192_v21, %v1499_v9  ;;  %v1505_v13 = vshll.u32 %v2193_v23, %v1499_v9  ;;  %v1508_v38 = vshll.u32 %v2194_v29, %v1499_v9 }
 0x1db   :  { %v1511_v3 = vshll.u32 %v2189_v5, %v1499_v9  ;;  %v1514_v12 = vshll.u32 %v2190_v7, %v1499_v9  ;;  %vm1517_vm11 = vcmp.lt.s32.totalorder %v1498_v20, 1  ;;  %v1649_v45 = vadd.s32 1, %v2157_v52 }
 0x1dc   :  { %v1503_v24 = vshrl.u32 %v2193_v23, %v1500_v8  ;;  %v1506_v33 = vshrl.u32 %v2194_v29, %v1500_v8  ;;  %v1509_v18 = vshrl.u32 %v2189_v5, %v1500_v8  ;;  %v1512_v46 = vshrl.u32 %v2190_v7, %v1500_v8 }
 0x1dd   :  { %v1515_v44 = vshrl.u32 %v2191_v10, %v1500_v8  ;;  %vm1518_vm12 = vcmp.lt.s32.totalorder %v1498_v20, 2  ;;  %vm1520_vm13 = vcmp.lt.s32.totalorder %v1498_v20, 4  ;;  %v1501_v4 = vshrl.u32 %v2192_v21, %v1500_v8 }
 0x1de   :  { %v1504_v30 = vor.u32 %v1503_v24, %v1502_v19  ;;  %v1507_v60 = vor.u32 %v1506_v33, %v1505_v13  ;;  %v1510_v42 = vor.u32 %v1509_v18, %v1508_v38  ;;  %v1513_v48 = vor.u32 %v1512_v46, %v1511_v3 }
 0x1df   :  { %v1516_v14 = vor.u32 %v1515_v44, %v1514_v12  ;;  %vm1519_vm14 = vcmp.lt.s32.totalorder %v1498_v20, 3  ;;  %vm1650_vm0 = vcmp.gt.s32.totalorder %v1649_v45, 0  ;;  %v2846_v43 = vshll.u32 %v1647_v32, 8 }
 0x1e0   :  { %v1522_v22 = vsel %vm1520_vm13, %v1510_v42, 2102212464  ;;  %v1525_v56 = vsel %vm1517_vm11, %v1504_v30, %v1507_v60  ;;  %v1529_v58 = vsel %vm1517_vm11, %v1507_v60, %v1510_v42  ;;  %v1526_v53 = vsel %vm1520_vm13, %v1513_v48, 920167782 }
 0x1e1   :  { %v1530_v37 = vsel %vm1520_vm13, %v1516_v14, 1326507024  ;;  %v1521_v40 = vsel %vm1517_vm11, %v1501_v4, %v1504_v30  ;;  %v1523_v15 = vsel %vm1519_vm14, %v1507_v60, %v1522_v22  ;;  %v1527_v26 = vsel %vm1519_vm14, %v1510_v42, %v1526_v53 }
 0x1e2   :  { %v1531_v54 = vsel %vm1519_vm14, %v1513_v48, %v1530_v37  ;;  %v1528_v57 = vsel %vm1518_vm12, %v1525_v56, %v1527_v26  ;;  %v1651_v49 = vsel %vm1650_vm0, %v1649_v45, 0  ;;  %v2844_v59 = vsel %vm1518_vm12, %v1521_v40, %v1523_v15 }
 0x1e3   :  { %v1532_v41 = vsel %vm1518_vm12, %v1529_v58, %v1531_v54  ;;  %v1558_v16 = vand.u32 65535, %v1528_v57  ;;  %v1559_v6 = vshrl.u32 %v1528_v57, 16  ;;  %v2848_v11 = vshrl.u32 %v1651_v49, 5  ;;  %v1475_v57 = vpop.f32.mrf.mxu3 }
 0x1e4   :  { %v1536_v62 = vand.u32 65535, %v1532_v41  ;;  %v1537_v28 = vshrl.u32 %v1532_v41, 16  ;;  %v1653_v50 = vand.u32 31, %v1651_v49  ;;  %v1432_v49 = vpop.permute.xlu1 %1431 }
 0x1e5   :  { %v1561_v36 = vmul.u32 %v1559_v6, %v1534_v34  ;;  %v1562_v51 = vmul.u32 %v1558_v16, %v1535_v47  ;;  %v1560_v9 = vmul.u32 %v1558_v16, %v1534_v34  ;;  %v1563_v8 = vmul.u32 %v1559_v6, %v1535_v47 }
 0x1e6   :  { %v1539_v0 = vmul.u32 %v1537_v28, %v1534_v34  ;;  %v1540_v55 = vmul.u32 %v1536_v62, %v1535_v47  ;;  %v1538_v2 = vmul.u32 %v1536_v62, %v1534_v34  ;;  %v1541_v39 = vmul.u32 %v1537_v28, %v1535_v47 }
 0x1e7   :  { %v1564_v20 = vshll.u32 %v1561_v36, 16  ;;  %v1565_v13 = vshrl.u32 %v1561_v36, 16  ;;  %v1566_v32 = vshll.u32 %v1562_v51, 16  ;;  %v2850_v24 = vsub.s32 32, %v1653_v50 }
 0x1e8   :  { %v1542_v31 = vshll.u32 %v1539_v0, 16  ;;  %v1543_v61 = vshrl.u32 %v1539_v0, 16  ;;  %v1544_v52 = vshll.u32 %v1540_v55, 16  ;;  %v1545_v19 = vshrl.u32 %v1540_v55, 16 }
 0x1e9   :  { %v1567_v18 = vshrl.u32 %v1562_v51, 16  ;;  %vm1568_vm2 = vc.u32 %v1560_v9, %v1564_v20  ;;  %v1570_v3 = vadd.s32 %v1564_v20, %v1560_v9  ;;  %v1656_v34 = vshll.u32 %v2192_v21, %v1653_v50 }
 0x1ea   :  { %vm1546_vm1 = vc.u32 %v1538_v2, %v1542_v31  ;;  %v1548_v38 = vadd.s32 %v1542_v31, %v1538_v2  ;;  %v1569_v12 = vsel %vm1568_vm2, 1, %v2188_v1  ;;  %v1659_v60 = vshll.u32 %v2193_v23, %v1653_v50 }
 0x1eb   :  { %v1547_v33 = vsel %vm1546_vm1, 1, %v2188_v1  ;;  %v1571_v30 = vadd.s32 %v1569_v12, %v1563_v8  ;;  %vm1572_vm4 = vc.u32 %v1570_v3, %v1566_v32  ;;  %v1657_v48 = vshrl.u32 %v2193_v23, %v2850_v24 }
 0x1ec   :  { %v1549_v46 = vadd.s32 %v1547_v33, %v1541_v39  ;;  %vm1550_vm3 = vc.u32 %v1548_v38, %v1544_v52  ;;  %v1573_v45 = vsel %vm1572_vm4, 1, %v2188_v1  ;;  %v1660_v14 = vshrl.u32 %v2194_v29, %v2850_v24 }
 0x1ed   :  { %v1551_v44 = vsel %vm1550_vm3, 1, %v2188_v1  ;;  %v1575_v4 = vadd.s32 %v1573_v45, %v1571_v30  ;;  %v1662_v22 = vshll.u32 %v2194_v29, %v1653_v50  ;;  %v1663_v56 = vshrl.u32 %v2189_v5, %v2850_v24 }
 0x1ee   :  { %v1553_v42 = vadd.s32 %v1551_v44, %v1549_v46  ;;  %v1665_v58 = vshll.u32 %v2189_v5, %v1653_v50  ;;  %v2866_v37 = vor.u32 %v1657_v48, %v1656_v34  ;;  %v2868_v40 = vor.u32 %v1660_v14, %v1659_v60 }
 0x1ef   :  { %v1666_v15 = vshrl.u32 %v2190_v7, %v2850_v24  ;;  %v1576_v23 = vadd.s32 %v1575_v4, %v1565_v13  ;;  %v2872_v26 = vor.u32 %v1663_v56, %v1662_v22  ;;  %v1668_v54 = vshll.u32 %v2190_v7, %v1653_v50 }
 0x1f0   :  { %v1554_v53 = vadd.s32 %v1553_v42, %v1543_v61  ;;  %v1669_v29 = vshrl.u32 %v2191_v10, %v2850_v24  ;;  %v2879_v5 = vadd.s32 %v1570_v3, %v1566_v32  ;;  %vm1671_vm5 = vcmp.lt.s32.totalorder %v2848_v11, 1 }
 0x1f1   :  { %v1667_v47 = vor.u32 %v1666_v15, %v1665_v58  ;;  %v1577_v62 = vadd.s32 %v1576_v23, %v1567_v18  ;;  %vm1674_vm6 = vcmp.lt.s32.totalorder %v2848_v11, 4  ;;  %v1679_v7 = vsel %vm1671_vm5, %v2866_v37, %v2868_v40 }
 0x1f2   :  { %v2877_v41 = vadd.s32 %v1554_v53, %v1545_v19  ;;  %v1670_v28 = vor.u32 %v1669_v29, %v1668_v54  ;;  %vm1673_vm15 = vcmp.lt.s32.totalorder %v2848_v11, 3  ;;  %v1476_v16 = vadd.f32 %v1475_v57, %v1432_v49  ;;  %v1478_v53 = vpop.f32.mrf.mxu3  ;;  %v1437_v54 = vpop.permute.xlu2 %1436 }
 0x1f3   :  { %v1680_v10 = vsel %vm1674_vm6, %v1667_v47, 920167782  ;;  %v1581_v6 = vadd.s32 1, %v1577_v62  ;;  %vm1672_vm8 = vcmp.lt.s32.totalorder %v2848_v11, 2  ;;  %v1683_v55 = vsel %vm1671_vm5, %v2868_v40, %v2872_v26 }
 0x1f4   :  { %vm1580_vm7 = vc.u32 %v2877_v41, %v2879_v5  ;;  %v1681_v0 = vsel %vm1673_vm15, %v2872_v26, %v1680_v10  ;;  %v1578_v50 = vmul.u32 %v2821_v17, %v2844_v59  ;;  %v1684_v39 = vsel %vm1674_vm6, %v1670_v28, 1326507024 }
 0x1f5   :  { %v1682_v2 = vsel %vm1672_vm8, %v1679_v7, %v1681_v0  ;;  %v1688_v36 = vand.u32 65535, %v2846_v43  ;;  %v1582_v51 = vsel %vm1580_vm7, %v1581_v6, %v1577_v62  ;;  %v1685_v31 = vsel %vm1673_vm15, %v1667_v47, %v1684_v39 }
 0x1f6   :  { %v1712_v61 = vand.u32 65535, %v1682_v2  ;;  %v1713_v9 = vshrl.u32 %v1682_v2, 16  ;;  %v1583_v8 = vadd.s32 %v1582_v51, %v1578_v50  ;;  %v1686_v52 = vsel %vm1672_vm8, %v1683_v55, %v1685_v31 }
 0x1f7   :  { %v1689_v17 = vshrl.u32 %v2846_v43, 16  ;;  %v2103_v59 = vmax.f32 %v1476_v16, 0.0  ;;  %v1690_v19 = vand.u32 65535, %v1686_v52  ;;  %v1691_v20 = vshrl.u32 %v1686_v52, 16 }
 0x1f8   :  { %v1715_v13 = vmul.u32 %v1713_v9, %v1688_v36  ;;  %v1584_v38 = vadd.s32 536870912, %v1583_v8  ;;  %v1714_v46 = vmul.u32 %v1712_v61, %v1688_v36  ;;  %v1676_v57 = vsel %vm1674_vm6, %v2872_v26, 2102212464 }
 0x1f9   :  { %v1716_v32 = vmul.u32 %v1712_v61, %v1689_v17  ;;  %v1693_v33 = vmul.u32 %v1691_v20, %v1688_v36  ;;  %v1694_v18 = vmul.u32 %v1690_v19, %v1689_v17  ;;  %2112 = vst.msk [vmem:[%s2993_s5 + $0x10] sm:$0xff] %vm2109_vm9, %v2103_v59  ;;  %v1692_v34 = vmul.u32 %v1690_v19, %v1688_v36 }
 0x1fa   :  { %v2916_v3 = vshrl.u32 %v1584_v38, 30  ;;  %v1718_v12 = vshll.u32 %v1715_v13, 16  ;;  %v1695_v44 = vmul.u32 %v1691_v20, %v1689_v17  ;;  %v1717_v60 = vmul.u32 %v1713_v9, %v1689_v17 }
 0x1fb   :  { %v1696_v30 = vshll.u32 %v1693_v33, 16  ;;  %v1698_v45 = vshll.u32 %v1694_v18, 16  ;;  %v1720_v48 = vshll.u32 %v1716_v32, 16  ;;  %v1697_v49 = vshrl.u32 %v1693_v33, 16 }
 0x1fc   :  { %v1586_v42 = vshll.u32 %v2916_v3, 30  ;;  %vm1722_vm10 = vc.u32 %v1714_v46, %v1718_v12  ;;  %v1724_v22 = vadd.s32 %v1718_v12, %v1714_v46  ;;  %v1479_v7 = vadd.f32 %v1478_v53, %v1437_v54 }
 0x1fd   :  { %vm1700_vm11 = vc.u32 %v1692_v34, %v1696_v30  ;;  %v1702_v14 = vadd.s32 %v1696_v30, %v1692_v34  ;;  %v1723_v4 = vsel %vm1722_vm10, 1, %v2188_v1  ;;  %v1655_v16 = vshrl.u32 %v2192_v21, %v2850_v24 }
 0x1fe   :  { %v1587_v56 = vsub.s32 %v1583_v8, %v1586_v42  ;;  %v1701_v58 = vsel %vm1700_vm11, 1, %v2188_v1  ;;  %v1725_v23 = vadd.s32 %v1723_v4, %v1717_v60  ;;  %vm1726_vm13 = vc.u32 %v1724_v22, %v1720_v48 }
 0x1ff   :  { %v1703_v15 = vadd.s32 %v1701_v58, %v1695_v44  ;;  %vm1704_vm12 = vc.u32 %v1702_v14, %v1698_v45  ;;  %v1727_v28 = vsel %vm1726_vm13, 1, %v2188_v1  ;;  %v1699_v6 = vshrl.u32 %v1694_v18, 16 }
 0x200   :  { %vm1588_vm14 = vcmp.lt.s32.totalorder %v1587_v56, 0  ;;  %v1589_v29 = vsub.s32 0, %v1587_v56  ;;  %v1705_v47 = vsel %vm1704_vm12, 1, %v2188_v1  ;;  %v1719_v0 = vshrl.u32 %v1715_v13, 16 }
 0x201   :  { %v1707_v62 = vadd.s32 %v1705_v47, %v1703_v15  ;;  %v1729_v2 = vadd.s32 %v1727_v28, %v1725_v23  ;;  %v2104_v39 = vmax.f32 %v1479_v7, 0.0  ;;  %v1675_v26 = vsel %vm1671_vm5, %v1655_v16, %v2866_v37 }
 0x202   :  { %v1590_v10 = vsel %vm1588_vm14, %v1589_v29, %v1587_v56  ;;  %v1677_v36 = vsel %vm1673_vm15, %v2868_v40, %v1676_v57  ;;  %v1721_v31 = vshrl.u32 %v1716_v32, 16  ;;  %v1728_v21 = vadd.s32 %v1724_v22, %v1720_v48 }
 0x203   :  { %v1591_v55 = vclz %v1590_v10  ;;  %v1708_v50 = vadd.s32 %v1707_v62, %v1697_v49  ;;  %v1730_v61 = vadd.s32 %v1729_v2, %v1719_v0  ;;  %2113 = vst.msk [vmem:[%s2993_s5 + $0x18] sm:$0xff] %vm2109_vm9, %v2104_v39  ;;  %v1678_v24 = vsel %vm1672_vm8, %v1675_v26, %v1677_v36 }
 0x204   :  { %v1579_v40 = vadd.s32 %v2879_v5, %v2877_v41  ;;  %v1732_v59 = vmul.u32 %v2846_v43, %v1678_v24  ;;  %vm1487_vm2 = vcmp.lt.s32.totalorder %v2811_v63, 0  ;;  %vm2949_vm4 = vcmp.le.f32.partialorder %v1485_v27, 0.7853982 }
 0x205   :  { %v2155_v1 = vadd.s32 4294967294, %v1591_v55  ;;  %v1709_v51 = vadd.s32 %v1708_v50, %v1699_v6  ;;  %v1731_v9 = vadd.s32 %v1730_v61, %v1721_v31  ;;  %v1609_v15 = vsub.s32 4, %v2916_v3 }
 0x206   :  { %vm1628_vm8 = vweird.f32 %v2811_v63  ;;  %vm1641_vm10 = vcmp.lt.s32.totalorder %v2817_v25, 0  ;;  %vm2968_vm11 = vcmp.le.f32.partialorder %v1639_v35, 0.7853982 }
 0x207   :  { %vm2156_vm0 = vcmp.lt.s32.totalorder %v2155_v1, 0  ;;  %vm1734_vm1 = vc.u32 %v1709_v51, %v1728_v21  ;;  %v1735_v17 = vadd.s32 1, %v1731_v9  ;;  %v1733_v47 = vadd.s32 %v1728_v21, %v1709_v51 }
 0x208   :  { %v1594_v37 = vsel %vm2156_vm0, 0, %v2155_v1  ;;  %v1610_v62 = vsel %vm1487_vm2, %v1609_v15, %v2916_v3  ;;  %vm1782_vm0 = vweird.f32 %v2817_v25 }
 0x209   :  { %v1595_v8 = vsub.s32 32, %v1594_v37  ;;  %v1599_v52 = vsub.s32 4294967266, %v1594_v37  ;;  %v1596_v19 = vshll.u32 %v1587_v56, %v1594_v37  ;;  %v1736_v38 = vsel %vm1734_vm1, %v1735_v17, %v1731_v9 }
 0x20a   :  { %v1737_v32 = vadd.s32 %v1736_v38, %v1732_v59  ;;  %v1612_v55 = vsel %vm2949_vm4, 0, %v1610_v62 }
 0x20b   :  { %v1597_v20 = vshrl.u32 %v1579_v40, %v1595_v8  ;;  %v1600_v13 = vadd.s32 127, %v1599_v52  ;;  %v1629_v51 = vand.u32 3, %v1612_v55 }
 0x20c   :  { %v1738_v11 = vadd.s32 536870912, %v1737_v32 }
 0x20d   :  { %v1598_v33 = vor.u32 %v1597_v20, %v1596_v19  ;;  %v1601_v18 = vshll.u32 %v1600_v13, 23  ;;  %vm1631_vm6 = vcmp.eq.s32.totalorder %v1629_v51, 0  ;;  %vm1634_vm7 = vcmp.eq.s32.totalorder %v1629_v51, 2 }
 0x20e   :  { %v2943_v12 = vshrl.u32 %v1738_v11, 30  ;;  %vm1630_vm15 = vcmp.lt.s32.totalorder %v1629_v51, 2 }
 0x20f   :  { %v1602_v46 = vor.u32 4788187, %v1601_v18  ;;  %v1605_v44 = vcvt.s32.f32 %v1598_v33 }
 0x210   :  { %v1740_v41 = vshll.u32 %v2943_v12, 30  ;;  %v1763_v33 = vsub.s32 4, %v2943_v12 }
 0x211   :  { %v1603_v34 = vand.u32 2147483647, %v1602_v46 }
 0x212   :  { %v1741_v30 = vsub.s32 %v1737_v32, %v1740_v41 }
 0x213   :  { %v1606_v5 = vmul.f32 %v1605_v44, %v1603_v34  ;;  %v1764_v34 = vsel %vm1641_vm10, %v1763_v33, %v2943_v12 }
 0x214   :  { %vm1742_vm3 = vcmp.lt.s32.totalorder %v1741_v30, 0  ;;  %v1743_v43 = vsub.s32 0, %v1741_v30 }
 0x215   :  { %v1607_v60 = vxor.u32 2147483648, %v1606_v5 }
 0x216   :  { %v1744_v14 = vsel %vm1742_vm3, %v1743_v43, %v1741_v30 }
 0x217   :  { %v1608_v45 = vsel %vm1487_vm2, %v1607_v60, %v1606_v5  ;;  %v1745_v22 = vclz %v1744_v14  ;;  %v1766_v5 = vsel %vm2968_vm11, 0, %v1764_v34 }
 0x218   :  { %v1611_v48 = vsel %vm2949_vm4, %v2811_v63, %v1608_v45  ;;  %v1783_v45 = vand.u32 3, %v1766_v5 }
 0x219   :  { %v1613_v4 = vmul.f32 %v1611_v48, %v1611_v48  ;;  %v2158_v53 = vadd.s32 4294967294, %v1745_v22 }
 0x21a   :  { %vm1785_vm12 = vcmp.eq.s32.totalorder %v1783_v45, 0  ;;  %vm1788_vm13 = vcmp.eq.s32.totalorder %v1783_v45, 2  ;;  %vm1784_vm14 = vcmp.lt.s32.totalorder %v1783_v45, 2 }
 0x21b   :  { %v1614_v56 = vmul.f32 -0.001358992, %v1613_v4  ;;  %v1621_v58 = vmul.f32 -0.00019511016, %v1613_v4  ;;  %vm2159_vm5 = vcmp.lt.s32.totalorder %v2158_v53, 0 }
 0x21c   :  { %v1748_v54 = vsel %vm2159_vm5, 0, %v2158_v53 }
 0x21d   :  { %v1615_v23 = vadd.f32 0.041655596, %v1614_v56  ;;  %v1622_v27 = vadd.f32 0.008332121, %v1621_v58  ;;  %v1749_v49 = vsub.s32 32, %v1748_v54  ;;  %v1753_v28 = vsub.s32 4294967266, %v1748_v54 }
 0x21e   :  { %v1750_v6 = vshll.u32 %v1741_v30, %v1748_v54 }
 0x21f   :  { %v1616_v29 = vmul.f32 %v1615_v23, %v1613_v4  ;;  %v1623_v57 = vmul.f32 %v1622_v27, %v1613_v4  ;;  %v1751_v16 = vshrl.u32 %v1733_v47, %v1749_v49  ;;  %v1754_v0 = vadd.s32 127, %v1753_v28 }
 0x221   :  { %v1617_v7 = vadd.f32 -0.4999988, %v1616_v29  ;;  %v1624_v10 = vadd.f32 -0.16666654, %v1623_v57  ;;  %v1752_v39 = vor.u32 %v1751_v16, %v1750_v6  ;;  %v1755_v26 = vshll.u32 %v1754_v0, 23 }
 0x223   :  { %v1618_v50 = vmul.f32 %v1617_v7, %v1613_v4  ;;  %v1625_v2 = vmul.f32 %v1624_v10, %v1613_v4  ;;  %v1756_v31 = vor.u32 4788187, %v1755_v26  ;;  %v1759_v24 = vcvt.s32.f32 %v1752_v39 }
 0x225   :  { %v1619_v36 = vadd.f32 1.0, %v1618_v50  ;;  %v1626_v1 = vadd.f32 1.0, %v1625_v2  ;;  %v1757_v3 = vand.u32 2147483647, %v1756_v31 }
 0x227   :  { %v1627_v61 = vmul.f32 %v1626_v1, %v1611_v48  ;;  %v1635_v21 = vxor.u32 2147483648, %v1619_v36  ;;  %v1760_v37 = vmul.f32 %v1759_v24, %v1757_v3 }
 0x229   :  { %v1632_v9 = vxor.u32 2147483648, %v1627_v61  ;;  %v1636_v8 = vsel %vm1634_vm7, %v1635_v21, %v1627_v61  ;;  %v1761_v17 = vxor.u32 2147483648, %v1760_v37 }
 0x22b   :  { %v1633_v40 = vsel %vm1631_vm6, %v1619_v36, %v1632_v9  ;;  %v1762_v20 = vsel %vm1641_vm10, %v1761_v17, %v1760_v37 }
 0x22c   :  { %v1637_v52 = vsel %vm1630_vm15, %v1633_v40, %v1636_v8  ;;  %v1765_v63 = vsel %vm2968_vm11, %v2817_v25, %v1762_v20 }
 0x22d   :  { %v1638_v59 = vsel %vm1628_vm8, nan, %v1637_v52  ;;  %v1767_v13 = vmul.f32 %v1765_v63, %v1765_v63 }
 0x22e   :  { %2110 = vst.msk [vmem:[%s2993_s5] sm:$0xff] %vm2109_vm9, %v1638_v59 }
 0x22f   :  { %v1768_v38 = vmul.f32 -0.001358992, %v1767_v13  ;;  %v1775_v32 = vmul.f32 -0.00019511016, %v1767_v13 }
 0x231   :  { %v1769_v18 = vadd.f32 0.041655596, %v1768_v38  ;;  %v1776_v35 = vadd.f32 0.008332121, %v1775_v32 }
 0x233   :  { %v1770_v11 = vmul.f32 %v1769_v18, %v1767_v13  ;;  %v1777_v46 = vmul.f32 %v1776_v35, %v1767_v13 }
 0x235   :  { %v1771_v44 = vadd.f32 -0.4999988, %v1770_v11  ;;  %v1778_v41 = vadd.f32 -0.16666654, %v1777_v46 }
 0x237   :  { %v1772_v30 = vmul.f32 %v1771_v44, %v1767_v13  ;;  %v1779_v60 = vmul.f32 %v1778_v41, %v1767_v13 }
 0x239   :  { %v1773_v43 = vadd.f32 1.0, %v1772_v30  ;;  %v1780_v42 = vadd.f32 1.0, %v1779_v60 }
 0x23b   :  { %v1781_v48 = vmul.f32 %v1780_v42, %v1765_v63  ;;  %v1789_v14 = vxor.u32 2147483648, %v1773_v43 }
 0x23d   :  { %v1786_v4 = vxor.u32 2147483648, %v1781_v48  ;;  %v1790_v56 = vsel %vm1788_vm13, %v1789_v14, %v1781_v48 }
 0x23f   :  { %v1787_v22 = vsel %vm1785_vm12, %v1773_v43, %v1786_v4 }
 0x240   :  { %v1791_v12 = vsel %vm1784_vm14, %v1787_v22, %v1790_v56 }
 0x241   :  { %v1792_v58 = vsel %vm1782_vm0, nan, %v1791_v12 }
 0x242   :  { %2111 = vst.msk [vmem:[%s2993_s5 + $0x8] sm:$0xff] %vm2109_vm9, %v1792_v58 }

</bundles_post_ra>
